<compile_context>
chip_gen: v7x
topology: tpu7x:2x2x1
jax: 0.10.0
libtpu: 0.0.40
codegen_flags: <defaults>
</compile_context>

<pallas_src>
import functools
import math

import jax
import jax.numpy as jnp
import numpy as np
from jax.experimental import pallas as pl
from jax.experimental.pallas import tpu as pltpu


# ---------------------------------------------------------------------------
# In-kernel compute
# ---------------------------------------------------------------------------
def _predict_stack(TB, c_in, k2, c_out, f_ref, wc_ref, b_ref, g_ref):
    """Per-pixel dynamic filters + grouped reductions for TB images.

    f_ref  : (TB, 3d, P) block, rows [0:d)=y, [d:2d)=m, [2d:3d)=s patches,
             feature order (channel, di, dj); pixels on the LANE axis.
    wc_ref : (dd, 2d) stacked [Linear1; Linear2] weights.
    b_ref  : (dd, 1) stacked bias.
    g_ref  : (c_in, d) per-channel tap-sum matrix (used only when k2 > 1).

    Returns a sublane-stacked (2*TB*c_out, P) matrix:
      rows [0 : TB*c_out)          = y-output of images 0..TB-1
      rows [TB*c_out : 2*TB*c_out) = m-output of images 0..TB-1
    so the whole x2 upsample can be done as one MXU matmul.
    """
    d = c_in * k2
    wc = wc_ref[...]                                # constants loaded once
    bias = b_ref[...]
    g = g_ref[...] if k2 > 1 else None

    oys, oms = [], []
    for img in range(TB):                           # static unroll over TB images
        f = f_ref[img]                              # (3d, P)
        ym = f[:2 * d]                              # [y; m] rows == Linear input
        y, m, s = f[:d], f[d:2 * d], f[2 * d:3 * d]

        # Linear1 + Linear2 fused into one output-stacked matmul.
        filt = jnp.dot(wc, ym, preferred_element_type=jnp.float32) + bias
        w1, w2 = filt[:d], filt[d:]                 # (d, P), (c_in*c_out, P)
        aw1, aw2 = jnp.abs(w1), jnp.abs(w2)

        if k2 == 1:                                 # nothing to sum over
            t_y, t_m, t_s = y * w1, m * aw1, s * aw1           # (c_in, P)
        else:                                       # sum over k^2 taps = tiny MXU matmul
            t_y = jnp.dot(g, y * w1, preferred_element_type=jnp.float32)
            t_m = jnp.dot(g, m * aw1, preferred_element_type=jnp.float32)
            t_s = jnp.dot(g, s * aw1, preferred_element_type=jnp.float32)

        # c_in contraction with (c_out, P) accumulators (static unroll; live
        # set stays a handful of lane-dense rows, no (P, c_in, c_out) cube).
        oy = t_y[0:1] * w2[:c_out]
        om = t_m[0:1] * aw2[:c_out]
        osum = t_s[0:1] * aw2[:c_out]
        for c in range(1, c_in):
            sl = slice(c * c_out, (c + 1) * c_out)
            oy = oy + t_y[c:c + 1] * w2[sl]
            om = om + t_m[c:c + 1] * aw2[sl]
            osum = osum + t_s[c:c + 1] * aw2[sl]

        # m/s with EUP approx reciprocal + one Newton step.  Like the PyTorch
        # module there is no epsilon guard (osum > 0 for the intended inputs).
        r = pl.reciprocal(osum, approx=True)
        r = r * (2.0 - osum * r)
        oys.append(oy)
        oms.append(om * r)

    return jnp.concatenate(oys + oms, axis=0)       # (2*TB*c_out, P)


def _store_outputs(TB, c_out, up, oy_ref, om_ref):
    """Split the stacked (2*TB*c_out, N) result into the two output blocks."""
    half = TB * c_out
    for img in range(TB):
        oy_ref[img] = up[img * c_out:(img + 1) * c_out]
        om_ref[img] = up[half + img * c_out: half + (img + 1) * c_out]


def _convtm_kron_kernel(TB, c_in, k2, c_out,
                        f_ref, wc_ref, b_ref, g_ref, k_ref, oy_ref, om_ref):
    """Per-pixel compute + fused bilinear x2 as ONE kron(R, C)^T matmul."""
    stacked = _predict_stack(TB, c_in, k2, c_out, f_ref, wc_ref, b_ref, g_ref)
    up = jnp.dot(stacked, k_ref[...], preferred_element_type=jnp.float32)
    _store_outputs(TB, c_out, up, oy_ref, om_ref)


def _convtm_sep_kernel(TB, c_in, k2, c_out, Ho, Wo, h_taps,
                       f_ref, wc_ref, b_ref, g_ref, ct_ref, oy_ref, om_ref):
    """Per-pixel compute + separable bilinear x2, kept lane-flat throughout.

    W-interp: one (M, Wo) @ (Wo, Wout) matmul per input row block (no
    lane->sublane reshapes, no block-diagonal zero matmuls).
    H-interp: 2-tap statically-unrolled mix over output rows, then one
    lane-dense store per image.
    """
    stacked = _predict_stack(TB, c_in, k2, c_out, f_ref, wc_ref, b_ref, g_ref)
    ct = ct_ref[...]                                # (Wo, Wout)
    tw = [jnp.dot(stacked[:, i * Wo:(i + 1) * Wo], ct,
                  preferred_element_type=jnp.float32) for i in range(Ho)]
    rows = []
    for lo, frac in h_taps:                         # static (int, float) taps
        if frac == 0.0:
            rows.append(tw[lo])
        else:
            rows.append((1.0 - frac) * tw[lo] + frac * tw[lo + 1])
    up = jnp.concatenate(rows, axis=-1)             # (2*TB*c_out, Hout*Wout)
    _store_outputs(TB, c_out, up, oy_ref, om_ref)


# ---------------------------------------------------------------------------
# Plain-JAX glue (layout prep only, no compute)
# ---------------------------------------------------------------------------
def _interp_taps(n_in, n_out):
    """Static (lo, frac) taps of a bilinear resize, align_corners=True."""
    if n_in == 1:
        return tuple((0, 0.0) for _ in range(n_out))
    taps = []
    for o in range(n_out):
        pos = o * (n_in - 1) / (n_out - 1)
        lo = min(int(math.floor(pos)), n_in - 2)
        taps.append((lo, float(pos - lo)))
    return tuple(taps)


def interp_matrix(n_in, n_out, dtype=jnp.float32):
    """Row-interpolation matrix for bilinear upsample, align_corners=True."""
    M = np.zeros((n_out, n_in), np.float64)
    if n_in == 1:
        M[:, 0] = 1.0
    else:
        for o, (lo, frac) in enumerate(_interp_taps(n_in, n_out)):
            M[o, lo] += 1.0 - frac
            M[o, lo + 1] += frac
    return jnp.asarray(M, dtype)


def extract_patches(x, k, pad, stride):
    """Replicate-pad + unfold, feature order (channel, di, dj) like the module.

    x: (B, C, H, W)  ->  (B, C*k*k, Ho*Wo)   pixel index = i*Wo + j (row-major).
    """
    B, C, _, _ = x.shape
    xp = jnp.pad(x, ((0, 0), (0, 0), (pad, pad), (pad, pad)), mode="edge")
    _, _, Hp, Wp = xp.shape
    Ho = (Hp - k) // stride + 1
    Wo = (Wp - k) // stride + 1
    cols = []
    for di in range(k):
        for dj in range(k):
            cols.append(xp[:, :,
                           di:di + (Ho - 1) * stride + 1:stride,
                           dj:dj + (Wo - 1) * stride + 1:stride])
    p = jnp.stack(cols, axis=2)                      # (B, C, k*k, Ho, Wo)
    return p.reshape(B, C * k * k, Ho * Wo)


def _choose_tb(B, c_out, target_rows=256, min_steps=4):
    """Images per grid step: pack ~target_rows MXU rows (2*TB*c_out), but keep
    >= min_steps grid steps (pipelining / both v7x TCs) when the batch allows."""
    divisors = [t for t in range(1, B + 1) if B % t == 0]
    ok = [t for t in divisors if 2 * t * c_out <= target_rows] or [1]
    with_steps = [t for t in ok if B // t >= min_steps]
    return max(with_steps) if with_steps else max(ok)


def _vmem_budget_bytes():
    """Scoped-VMEM budget: ~3/4 of physical, capped at 64 MiB
    (v5e/v6e 128 MiB -> 64 MiB; v7x 64 MiB -> 48 MiB)."""
    cap = 128 * 1024 * 1024
    try:
        cap = int(pltpu.get_tpu_info().vmem_capacity_bytes)
    except Exception:
        pass
    return int(min(64 * 1024 * 1024, cap * 3 // 4))


def conv_t_m(x, m, s, params, *, kernel_size=1, padding=0, stride=1,
             target_rows=256, kron_max_pixels=512, use_kron=None):
    """Forward pass of ConvT_M.  Inputs NCHW float32; params in torch (out,in) layout."""
    w1, b1, w2, b2 = params["w1"], params["b1"], params["w2"], params["b2"]
    B, c_in, H, W = x.shape
    k2 = kernel_size * kernel_size
    d = c_in * k2
    c_out = w2.shape[0] // c_in
    Ho, Wo = H // stride, W // stride
    P = Ho * Wo
    Hout, Wout = 2 * Ho, 2 * Wo
    dd = d + c_in * c_out

    TB = _choose_tb(B, c_out, target_rows)
    nblk = B // TB

    # Patches (features, pixels): pixels on lanes.  k=1/stride=1/pad=0 is a
    # pure reshape (no extra HBM traffic).
    # TODO(synk): for kernel_size > 1, move the unfold into the kernel (shifted
    # VMEM slices of the padded NCHW input) to avoid the ~3*k^2x patch blowup.
    if kernel_size == 1 and stride == 1 and padding == 0:
        def patches(v):
            return v.reshape(B, c_in, P).astype(jnp.float32)
    else:
        def patches(v):
            return extract_patches(v, kernel_size, padding, stride).astype(jnp.float32)

    # One merged input array -> one DMA per grid step (y rows, then m, then s).
    feats = jnp.concatenate([patches(x), patches(m), patches(s)], axis=1)   # (B, 3d, P)

    # Fuse Linear1+Linear2 along the output dim (one matmul in-kernel).
    wc = jnp.concatenate([w1, w2], axis=0).astype(jnp.float32)              # (dd, 2d)
    bc = jnp.concatenate([b1, b2], axis=0).reshape(dd, 1).astype(jnp.float32)
    g = jnp.repeat(jnp.eye(c_in, dtype=jnp.float32), k2, axis=1)            # (c_in, d)

    R = interp_matrix(Ho, Hout)      # (Hout, Ho)
    Cm = interp_matrix(Wo, Wout)     # (Wout, Wo)

    vmem_budget = _vmem_budget_bytes()

    if use_kron is None:
        # FLOP/VMEM aware: the kron matrix has <=4 nonzeros per column, so the
        # kron matmul inflates upsample FLOPs ~2*Ho x.  Only use it for small
        # images (lower kron_max_pixels further on v5e) and when the (P, 4P)
        # matrix + double buffer fits comfortably in the VMEM budget.
        kron_bytes = P * (4 * P) * 4
        use_kron = (P <= kron_max_pixels) and (2 * kron_bytes <= vmem_budget // 4)

    # Constant operands: index_map is constant -> DMA'd once per call.
    # TODO(synk): single-buffer these (pl.Buffered(1)) to reclaim v7x VMEM
    # headroom once that pipeline_mode is guaranteed on the Mosaic grid pipeline.
    const_specs = [
        pl.BlockSpec((dd, 2 * d), lambda i: (0, 0)),
        pl.BlockSpec((dd, 1), lambda i: (0, 0)),
        pl.BlockSpec((c_in, d), lambda i: (0, 0)),
    ]
    in_specs = [pl.BlockSpec((TB, 3 * d, P), lambda i: (i, 0, 0))] + const_specs

    # Flat lane-dense outputs on BOTH paths (unmasked stores); 4-D only outside.
    out_shape = (jax.ShapeDtypeStruct((B, c_out, Hout * Wout), jnp.float32),
                 jax.ShapeDtypeStruct((B, c_out, Hout * Wout), jnp.float32))
    out_specs = [pl.BlockSpec((TB, c_out, Hout * Wout), lambda i: (i, 0, 0)),
                 pl.BlockSpec((TB, c_out, Hout * Wout), lambda i: (i, 0, 0))]

    if use_kron:
        kmat = jnp.kron(R, Cm).T.astype(jnp.float32)                        # (P, Hout*Wout)
        kern = functools.partial(_convtm_kron_kernel, TB, c_in, k2, c_out)
        extra_inputs = (kmat,)
        extra_specs = [pl.BlockSpec((P, Hout * Wout), lambda i: (0, 0))]
    else:
        ct = Cm.T.astype(jnp.float32)                                       # (Wo, Wout)
        h_taps = _interp_taps(Ho, Hout)
        kern = functools.partial(_convtm_sep_kernel, TB, c_in, k2, c_out,
                                 Ho, Wo, h_taps)
        extra_inputs = (ct,)
        extra_specs = [pl.BlockSpec((Wo, Wout), lambda i: (0, 0))]
        # TODO(synk): for very large Ho*Wo also tile the pixel axis (the whole
        # image currently rides in one block; vreg pressure grows past ~512 lanes).

    oy, om = pl.pallas_call(
        kern,
        out_shape=out_shape,
        grid_spec=pltpu.PrefetchScalarGridSpec(
            num_scalar_prefetch=0,
            grid=(nblk,),
            in_specs=in_specs + extra_specs,
            out_specs=out_specs,
        ),
        compiler_params=pltpu.CompilerParams(
            dimension_semantics=("parallel",),
            vmem_limit_bytes=vmem_budget),
    )(feats, wc, bc, g, *extra_inputs)

    y_up = oy.reshape(B, c_out, Hout, Wout)          # already NCHW -- no transposes
    m_up = om.reshape(B, c_out, Hout, Wout)
    return y_up, m_up, jnp.ones_like(m_up)


# ---------------------------------------------------------------------------
# Pure-JAX reference (for correctness check)
# ---------------------------------------------------------------------------
def reference(x, m, s, params, *, kernel_size=1, padding=0, stride=1):
    B, c_in, H, W = x.shape
    k2 = kernel_size * kernel_size
    d = c_in * k2
    c_out = params["w2"].shape[0] // c_in
    Ho, Wo = H // stride, W // stride

    def patches(v):
        return extract_patches(v, kernel_size, padding, stride).reshape(
            B, c_in, k2, Ho, Wo).transpose(0, 3, 4, 1, 2)   # (B, Ho, Wo, c_in, k2)

    yp, mp, sp = patches(x), patches(m), patches(s)
    feat = jnp.concatenate([yp.reshape(B, Ho, Wo, d),
                            mp.reshape(B, Ho, Wo, d)], -1)
    w1 = (feat @ params["w1"].T + params["b1"]).reshape(B, Ho, Wo, c_in, k2)
    w2 = (feat @ params["w2"].T + params["b2"]).reshape(B, Ho, Wo, c_in, c_out)

    y = jnp.sum(jnp.sum(yp * w1, 4, keepdims=True) * w2, 3).transpose(0, 3, 1, 2)
    m_y = jnp.sum(jnp.sum(mp * jnp.abs(w1), 4, keepdims=True) * jnp.abs(w2), 3
                  ).transpose(0, 3, 1, 2)
    s_y = jnp.sum(jnp.sum(sp * jnp.abs(w1), 4, keepdims=True) * jnp.abs(w2), 3
                  ).transpose(0, 3, 1, 2)
    m_y = m_y / s_y

    R = interp_matrix(Ho, 2 * Ho)
    Cm = interp_matrix(Wo, 2 * Wo)
    up = lambda img: jnp.einsum("oi,bcij,pj->bcop", R, img, Cm)
    y_up, m_up = up(y), up(m_y)
    return y_up, m_up, jnp.ones_like(m_up)


# ---------------------------------------------------------------------------
if __name__ == "__main__":
    B, c_in, c_out, H, W = 2, 4, 8, 16, 16
    kernel_size, padding, stride = 1, 0, 1
    d = c_in * kernel_size ** 2
    d_in = 2 * d

    key = jax.random.PRNGKey(0)
    kx, km, kw1, kb1, kw2, kb2 = jax.random.split(key, 6)

    x = jax.random.normal(kx, (B, c_in, H, W), jnp.float32)
    m = jax.random.uniform(km, (B, c_in, H, W), jnp.float32,
                           minval=0.1, maxval=1.0)
    s = jnp.ones((B, c_in, H, W), jnp.float32)

    # nn.Linear-style parameters, stored (out_features, in_features).
    params = {
        "w1": 0.1 * jax.random.normal(kw1, (d, d_in), jnp.float32),
        "b1": 0.1 * jax.random.normal(kb1, (d,), jnp.float32),
        "w2": 0.1 * jax.random.normal(kw2, (c_in * c_out, d_in), jnp.float32),
        "b2": 0.1 * jax.random.normal(kb2, (c_in * c_out,), jnp.float32),
    }

    y_ref, m_ref, _ = reference(
        x, m, s, params, kernel_size=kernel_size, padding=padding, stride=stride)

    # Fused kernel, kron upsample path (the default at these shapes).
    y_up, m_up, ones = jax.block_until_ready(
        conv_t_m(x, m, s, params,
                 kernel_size=kernel_size, padding=padding, stride=stride))
    assert y_up.shape == (B, c_out, 2 * H, 2 * W)
    assert m_up.shape == (B, c_out, 2 * H, 2 * W)
    assert jnp.allclose(y_up, y_ref, atol=1e-4, rtol=1e-4)
    assert jnp.allclose(m_up, m_ref, atol=1e-4, rtol=1e-4)
    assert jnp.all(ones == 1.0)

    # Also exercise the separable fallback path (used for larger images).
    y_sep, m_sep, _ = jax.block_until_ready(
        conv_t_m(x, m, s, params, kernel_size=kernel_size, padding=padding,
                 stride=stride, use_kron=False))
    assert jnp.allclose(y_sep, y_ref, atol=1e-4, rtol=1e-4)
    assert jnp.allclose(m_sep, m_ref, atol=1e-4, rtol=1e-4)

    print("KERNEL_OK")
</pallas_src>

<mosaic_0001>
module attributes {stable_mosaic.version = 11 : i64} {
  func.func @_convtm_kron_kernel(%arg0: i32, %arg1: memref<2x12x256xf32, #tpu.memory_space<vmem>>, %arg2: memref<36x8xf32, #tpu.memory_space<vmem>>, %arg3: memref<36x1xf32, #tpu.memory_space<vmem>>, %arg4: memref<4x4xf32, #tpu.memory_space<vmem>>, %arg5: memref<256x1024xf32, #tpu.memory_space<vmem>>, %arg6: memref<2x8x1024xf32, #tpu.memory_space<vmem>>, %arg7: memref<2x8x1024xf32, #tpu.memory_space<vmem>>) attributes {dimension_semantics = [#tpu.dimension_semantics<parallel>], iteration_bounds = array<i64: 1>, scalar_prefetch = 0 : i64, scratch_operands = 0 : i64, tpu.core_type = #tpu.core_type<tc>, window_params = [{transform_indices = @transform_0, window_bounds = array<i64: 2, 12, 256>}, {pipeline_mode = #tpu.pipeline_mode<synchronous>, transform_indices = @transform_1, window_bounds = array<i64: 36, 8>}, {pipeline_mode = #tpu.pipeline_mode<synchronous>, transform_indices = @transform_2, window_bounds = array<i64: 36, 1>}, {pipeline_mode = #tpu.pipeline_mode<synchronous>, transform_indices = @transform_3, window_bounds = array<i64: 4, 4>}, {pipeline_mode = #tpu.pipeline_mode<synchronous>, transform_indices = @transform_4, window_bounds = array<i64: 256, 1024>}, {transform_indices = @transform_5, window_bounds = array<i64: 2, 8, 1024>}, {transform_indices = @transform_6, window_bounds = array<i64: 2, 8, 1024>}]} {
    %c0 = arith.constant 0 : index
    %c0_0 = arith.constant 0 : index
    %0 = vector.load %arg2[%c0, %c0_0] : memref<36x8xf32, #tpu.memory_space<vmem>>, vector<36x8xf32>
    %c0_1 = arith.constant 0 : index
    %c0_2 = arith.constant 0 : index
    %1 = vector.load %arg3[%c0_1, %c0_2] : memref<36x1xf32, #tpu.memory_space<vmem>>, vector<36x1xf32>
    %c0_3 = arith.constant 0 : index
    %c0_4 = arith.constant 0 : index
    %c0_5 = arith.constant 0 : index
    %2 = vector.load %arg1[%c0_3, %c0_4, %c0_5] : memref<2x12x256xf32, #tpu.memory_space<vmem>>, vector<1x12x256xf32>
    %3 = vector.shape_cast %2 : vector<1x12x256xf32> to vector<12x256xf32>
    %4 = vector.extract_strided_slice %3 {offsets = [0, 0], sizes = [8, 256], strides = [1, 1]} : vector<12x256xf32> to vector<8x256xf32>
    %5 = vector.extract_strided_slice %3 {offsets = [0, 0], sizes = [4, 256], strides = [1, 1]} : vector<12x256xf32> to vector<4x256xf32>
    %6 = vector.extract_strided_slice %3 {offsets = [4, 0], sizes = [4, 256], strides = [1, 1]} : vector<12x256xf32> to vector<4x256xf32>
    %7 = vector.extract_strided_slice %3 {offsets = [8, 0], sizes = [4, 256], strides = [1, 1]} : vector<12x256xf32> to vector<4x256xf32>
    %cst = arith.constant dense<0.000000e+00> : vector<36x256xf32>
    %8 = tpu.matmul %0, %4, %cst {dimension_numbers = #tpu.dot_dimension_numbers<[1], [0], [0], [1], [0, 0, 1, 1], [], []>} : vector<36x8xf32>, vector<8x256xf32>, vector<36x256xf32> -> vector<36x256xf32>
    %9 = vector.broadcast %1 : vector<36x1xf32> to vector<36x256xf32>
    %10 = arith.addf %8, %9 : vector<36x256xf32>
    %11 = vector.extract_strided_slice %10 {offsets = [0, 0], sizes = [4, 256], strides = [1, 1]} : vector<36x256xf32> to vector<4x256xf32>
    %12 = vector.extract_strided_slice %10 {offsets = [4, 0], sizes = [32, 256], strides = [1, 1]} : vector<36x256xf32> to vector<32x256xf32>
    %13 = math.absf %11 : vector<4x256xf32>
    %14 = math.absf %12 : vector<32x256xf32>
    %15 = arith.mulf %5, %11 : vector<4x256xf32>
    %16 = arith.mulf %6, %13 : vector<4x256xf32>
    %17 = arith.mulf %7, %13 : vector<4x256xf32>
    %18 = vector.extract_strided_slice %15 {offsets = [0, 0], sizes = [1, 256], strides = [1, 1]} : vector<4x256xf32> to vector<1x256xf32>
    %19 = vector.extract_strided_slice %12 {offsets = [0, 0], sizes = [8, 256], strides = [1, 1]} : vector<32x256xf32> to vector<8x256xf32>
    %20 = vector.broadcast %18 : vector<1x256xf32> to vector<8x256xf32>
    %21 = arith.mulf %20, %19 : vector<8x256xf32>
    %22 = vector.extract_strided_slice %16 {offsets = [0, 0], sizes = [1, 256], strides = [1, 1]} : vector<4x256xf32> to vector<1x256xf32>
    %23 = vector.extract_strided_slice %14 {offsets = [0, 0], sizes = [8, 256], strides = [1, 1]} : vector<32x256xf32> to vector<8x256xf32>
    %24 = vector.broadcast %22 : vector<1x256xf32> to vector<8x256xf32>
    %25 = arith.mulf %24, %23 : vector<8x256xf32>
    %26 = vector.extract_strided_slice %17 {offsets = [0, 0], sizes = [1, 256], strides = [1, 1]} : vector<4x256xf32> to vector<1x256xf32>
    %27 = vector.extract_strided_slice %14 {offsets = [0, 0], sizes = [8, 256], strides = [1, 1]} : vector<32x256xf32> to vector<8x256xf32>
    %28 = vector.broadcast %26 : vector<1x256xf32> to vector<8x256xf32>
    %29 = arith.mulf %28, %27 : vector<8x256xf32>
    %30 = vector.extract_strided_slice %15 {offsets = [1, 0], sizes = [1, 256], strides = [1, 1]} : vector<4x256xf32> to vector<1x256xf32>
    %31 = vector.extract_strided_slice %12 {offsets = [8, 0], sizes = [8, 256], strides = [1, 1]} : vector<32x256xf32> to vector<8x256xf32>
    %32 = vector.broadcast %30 : vector<1x256xf32> to vector<8x256xf32>
    %33 = arith.mulf %32, %31 : vector<8x256xf32>
    %34 = arith.addf %21, %33 : vector<8x256xf32>
    %35 = vector.extract_strided_slice %16 {offsets = [1, 0], sizes = [1, 256], strides = [1, 1]} : vector<4x256xf32> to vector<1x256xf32>
    %36 = vector.extract_strided_slice %14 {offsets = [8, 0], sizes = [8, 256], strides = [1, 1]} : vector<32x256xf32> to vector<8x256xf32>
    %37 = vector.broadcast %35 : vector<1x256xf32> to vector<8x256xf32>
    %38 = arith.mulf %37, %36 : vector<8x256xf32>
    %39 = arith.addf %25, %38 : vector<8x256xf32>
    %40 = vector.extract_strided_slice %17 {offsets = [1, 0], sizes = [1, 256], strides = [1, 1]} : vector<4x256xf32> to vector<1x256xf32>
    %41 = vector.extract_strided_slice %14 {offsets = [8, 0], sizes = [8, 256], strides = [1, 1]} : vector<32x256xf32> to vector<8x256xf32>
    %42 = vector.broadcast %40 : vector<1x256xf32> to vector<8x256xf32>
    %43 = arith.mulf %42, %41 : vector<8x256xf32>
    %44 = arith.addf %29, %43 : vector<8x256xf32>
    %45 = vector.extract_strided_slice %15 {offsets = [2, 0], sizes = [1, 256], strides = [1, 1]} : vector<4x256xf32> to vector<1x256xf32>
    %46 = vector.extract_strided_slice %12 {offsets = [16, 0], sizes = [8, 256], strides = [1, 1]} : vector<32x256xf32> to vector<8x256xf32>
    %47 = vector.broadcast %45 : vector<1x256xf32> to vector<8x256xf32>
    %48 = arith.mulf %47, %46 : vector<8x256xf32>
    %49 = arith.addf %34, %48 : vector<8x256xf32>
    %50 = vector.extract_strided_slice %16 {offsets = [2, 0], sizes = [1, 256], strides = [1, 1]} : vector<4x256xf32> to vector<1x256xf32>
    %51 = vector.extract_strided_slice %14 {offsets = [16, 0], sizes = [8, 256], strides = [1, 1]} : vector<32x256xf32> to vector<8x256xf32>
    %52 = vector.broadcast %50 : vector<1x256xf32> to vector<8x256xf32>
    %53 = arith.mulf %52, %51 : vector<8x256xf32>
    %54 = arith.addf %39, %53 : vector<8x256xf32>
    %55 = vector.extract_strided_slice %17 {offsets = [2, 0], sizes = [1, 256], strides = [1, 1]} : vector<4x256xf32> to vector<1x256xf32>
    %56 = vector.extract_strided_slice %14 {offsets = [16, 0], sizes = [8, 256], strides = [1, 1]} : vector<32x256xf32> to vector<8x256xf32>
    %57 = vector.broadcast %55 : vector<1x256xf32> to vector<8x256xf32>
    %58 = arith.mulf %57, %56 : vector<8x256xf32>
    %59 = arith.addf %44, %58 : vector<8x256xf32>
    %60 = vector.extract_strided_slice %15 {offsets = [3, 0], sizes = [1, 256], strides = [1, 1]} : vector<4x256xf32> to vector<1x256xf32>
    %61 = vector.extract_strided_slice %12 {offsets = [24, 0], sizes = [8, 256], strides = [1, 1]} : vector<32x256xf32> to vector<8x256xf32>
    %62 = vector.broadcast %60 : vector<1x256xf32> to vector<8x256xf32>
    %63 = arith.mulf %62, %61 : vector<8x256xf32>
    %64 = arith.addf %49, %63 : vector<8x256xf32>
    %65 = vector.extract_strided_slice %16 {offsets = [3, 0], sizes = [1, 256], strides = [1, 1]} : vector<4x256xf32> to vector<1x256xf32>
    %66 = vector.extract_strided_slice %14 {offsets = [24, 0], sizes = [8, 256], strides = [1, 1]} : vector<32x256xf32> to vector<8x256xf32>
    %67 = vector.broadcast %65 : vector<1x256xf32> to vector<8x256xf32>
    %68 = arith.mulf %67, %66 : vector<8x256xf32>
    %69 = arith.addf %54, %68 : vector<8x256xf32>
    %70 = vector.extract_strided_slice %17 {offsets = [3, 0], sizes = [1, 256], strides = [1, 1]} : vector<4x256xf32> to vector<1x256xf32>
    %71 = vector.extract_strided_slice %14 {offsets = [24, 0], sizes = [8, 256], strides = [1, 1]} : vector<32x256xf32> to vector<8x256xf32>
    %72 = vector.broadcast %70 : vector<1x256xf32> to vector<8x256xf32>
    %73 = arith.mulf %72, %71 : vector<8x256xf32>
    %74 = arith.addf %59, %73 : vector<8x256xf32>
    %75 = tpu.reciprocal %74 {approx = true} : vector<8x256xf32> -> vector<8x256xf32>
    %76 = arith.mulf %74, %75 : vector<8x256xf32>
    %cst_6 = arith.constant 2.000000e+00 : f32
    %77 = vector.broadcast %cst_6 : f32 to vector<8x256xf32>
    %78 = arith.subf %77, %76 : vector<8x256xf32>
    %79 = arith.mulf %75, %78 : vector<8x256xf32>
    %80 = arith.mulf %69, %79 : vector<8x256xf32>
    %c1 = arith.constant 1 : index
    %c0_7 = arith.constant 0 : index
    %c0_8 = arith.constant 0 : index
    %81 = vector.load %arg1[%c1, %c0_7, %c0_8] : memref<2x12x256xf32, #tpu.memory_space<vmem>>, vector<1x12x256xf32>
    %82 = vector.shape_cast %81 : vector<1x12x256xf32> to vector<12x256xf32>
    %83 = vector.extract_strided_slice %82 {offsets = [0, 0], sizes = [8, 256], strides = [1, 1]} : vector<12x256xf32> to vector<8x256xf32>
    %84 = vector.extract_strided_slice %82 {offsets = [0, 0], sizes = [4, 256], strides = [1, 1]} : vector<12x256xf32> to vector<4x256xf32>
    %85 = vector.extract_strided_slice %82 {offsets = [4, 0], sizes = [4, 256], strides = [1, 1]} : vector<12x256xf32> to vector<4x256xf32>
    %86 = vector.extract_strided_slice %82 {offsets = [8, 0], sizes = [4, 256], strides = [1, 1]} : vector<12x256xf32> to vector<4x256xf32>
    %cst_9 = arith.constant dense<0.000000e+00> : vector<36x256xf32>
    %87 = tpu.matmul %0, %83, %cst_9 {dimension_numbers = #tpu.dot_dimension_numbers<[1], [0], [0], [1], [0, 0, 1, 1], [], []>} : vector<36x8xf32>, vector<8x256xf32>, vector<36x256xf32> -> vector<36x256xf32>
    %88 = vector.broadcast %1 : vector<36x1xf32> to vector<36x256xf32>
    %89 = arith.addf %87, %88 : vector<36x256xf32>
    %90 = vector.extract_strided_slice %89 {offsets = [0, 0], sizes = [4, 256], strides = [1, 1]} : vector<36x256xf32> to vector<4x256xf32>
    %91 = vector.extract_strided_slice %89 {offsets = [4, 0], sizes = [32, 256], strides = [1, 1]} : vector<36x256xf32> to vector<32x256xf32>
    %92 = math.absf %90 : vector<4x256xf32>
    %93 = math.absf %91 : vector<32x256xf32>
    %94 = arith.mulf %84, %90 : vector<4x256xf32>
    %95 = arith.mulf %85, %92 : vector<4x256xf32>
    %96 = arith.mulf %86, %92 : vector<4x256xf32>
    %97 = vector.extract_strided_slice %94 {offsets = [0, 0], sizes = [1, 256], strides = [1, 1]} : vector<4x256xf32> to vector<1x256xf32>
    %98 = vector.extract_strided_slice %91 {offsets = [0, 0], sizes = [8, 256], strides = [1, 1]} : vector<32x256xf32> to vector<8x256xf32>
    %99 = vector.broadcast %97 : vector<1x256xf32> to vector<8x256xf32>
    %100 = arith.mulf %99, %98 : vector<8x256xf32>
    %101 = vector.extract_strided_slice %95 {offsets = [0, 0], sizes = [1, 256], strides = [1, 1]} : vector<4x256xf32> to vector<1x256xf32>
    %102 = vector.extract_strided_slice %93 {offsets = [0, 0], sizes = [8, 256], strides = [1, 1]} : vector<32x256xf32> to vector<8x256xf32>
    %103 = vector.broadcast %101 : vector<1x256xf32> to vector<8x256xf32>
    %104 = arith.mulf %103, %102 : vector<8x256xf32>
    %105 = vector.extract_strided_slice %96 {offsets = [0, 0], sizes = [1, 256], strides = [1, 1]} : vector<4x256xf32> to vector<1x256xf32>
    %106 = vector.extract_strided_slice %93 {offsets = [0, 0], sizes = [8, 256], strides = [1, 1]} : vector<32x256xf32> to vector<8x256xf32>
    %107 = vector.broadcast %105 : vector<1x256xf32> to vector<8x256xf32>
    %108 = arith.mulf %107, %106 : vector<8x256xf32>
    %109 = vector.extract_strided_slice %94 {offsets = [1, 0], sizes = [1, 256], strides = [1, 1]} : vector<4x256xf32> to vector<1x256xf32>
    %110 = vector.extract_strided_slice %91 {offsets = [8, 0], sizes = [8, 256], strides = [1, 1]} : vector<32x256xf32> to vector<8x256xf32>
    %111 = vector.broadcast %109 : vector<1x256xf32> to vector<8x256xf32>
    %112 = arith.mulf %111, %110 : vector<8x256xf32>
    %113 = arith.addf %100, %112 : vector<8x256xf32>
    %114 = vector.extract_strided_slice %95 {offsets = [1, 0], sizes = [1, 256], strides = [1, 1]} : vector<4x256xf32> to vector<1x256xf32>
    %115 = vector.extract_strided_slice %93 {offsets = [8, 0], sizes = [8, 256], strides = [1, 1]} : vector<32x256xf32> to vector<8x256xf32>
    %116 = vector.broadcast %114 : vector<1x256xf32> to vector<8x256xf32>
    %117 = arith.mulf %116, %115 : vector<8x256xf32>
    %118 = arith.addf %104, %117 : vector<8x256xf32>
    %119 = vector.extract_strided_slice %96 {offsets = [1, 0], sizes = [1, 256], strides = [1, 1]} : vector<4x256xf32> to vector<1x256xf32>
    %120 = vector.extract_strided_slice %93 {offsets = [8, 0], sizes = [8, 256], strides = [1, 1]} : vector<32x256xf32> to vector<8x256xf32>
    %121 = vector.broadcast %119 : vector<1x256xf32> to vector<8x256xf32>
    %122 = arith.mulf %121, %120 : vector<8x256xf32>
    %123 = arith.addf %108, %122 : vector<8x256xf32>
    %124 = vector.extract_strided_slice %94 {offsets = [2, 0], sizes = [1, 256], strides = [1, 1]} : vector<4x256xf32> to vector<1x256xf32>
    %125 = vector.extract_strided_slice %91 {offsets = [16, 0], sizes = [8, 256], strides = [1, 1]} : vector<32x256xf32> to vector<8x256xf32>
    %126 = vector.broadcast %124 : vector<1x256xf32> to vector<8x256xf32>
    %127 = arith.mulf %126, %125 : vector<8x256xf32>
    %128 = arith.addf %113, %127 : vector<8x256xf32>
    %129 = vector.extract_strided_slice %95 {offsets = [2, 0], sizes = [1, 256], strides = [1, 1]} : vector<4x256xf32> to vector<1x256xf32>
    %130 = vector.extract_strided_slice %93 {offsets = [16, 0], sizes = [8, 256], strides = [1, 1]} : vector<32x256xf32> to vector<8x256xf32>
    %131 = vector.broadcast %129 : vector<1x256xf32> to vector<8x256xf32>
    %132 = arith.mulf %131, %130 : vector<8x256xf32>
    %133 = arith.addf %118, %132 : vector<8x256xf32>
    %134 = vector.extract_strided_slice %96 {offsets = [2, 0], sizes = [1, 256], strides = [1, 1]} : vector<4x256xf32> to vector<1x256xf32>
    %135 = vector.extract_strided_slice %93 {offsets = [16, 0], sizes = [8, 256], strides = [1, 1]} : vector<32x256xf32> to vector<8x256xf32>
    %136 = vector.broadcast %134 : vector<1x256xf32> to vector<8x256xf32>
    %137 = arith.mulf %136, %135 : vector<8x256xf32>
    %138 = arith.addf %123, %137 : vector<8x256xf32>
    %139 = vector.extract_strided_slice %94 {offsets = [3, 0], sizes = [1, 256], strides = [1, 1]} : vector<4x256xf32> to vector<1x256xf32>
    %140 = vector.extract_strided_slice %91 {offsets = [24, 0], sizes = [8, 256], strides = [1, 1]} : vector<32x256xf32> to vector<8x256xf32>
    %141 = vector.broadcast %139 : vector<1x256xf32> to vector<8x256xf32>
    %142 = arith.mulf %141, %140 : vector<8x256xf32>
    %143 = arith.addf %128, %142 : vector<8x256xf32>
    %144 = vector.extract_strided_slice %95 {offsets = [3, 0], sizes = [1, 256], strides = [1, 1]} : vector<4x256xf32> to vector<1x256xf32>
    %145 = vector.extract_strided_slice %93 {offsets = [24, 0], sizes = [8, 256], strides = [1, 1]} : vector<32x256xf32> to vector<8x256xf32>
    %146 = vector.broadcast %144 : vector<1x256xf32> to vector<8x256xf32>
    %147 = arith.mulf %146, %145 : vector<8x256xf32>
    %148 = arith.addf %133, %147 : vector<8x256xf32>
    %149 = vector.extract_strided_slice %96 {offsets = [3, 0], sizes = [1, 256], strides = [1, 1]} : vector<4x256xf32> to vector<1x256xf32>
    %150 = vector.extract_strided_slice %93 {offsets = [24, 0], sizes = [8, 256], strides = [1, 1]} : vector<32x256xf32> to vector<8x256xf32>
    %151 = vector.broadcast %149 : vector<1x256xf32> to vector<8x256xf32>
    %152 = arith.mulf %151, %150 : vector<8x256xf32>
    %153 = arith.addf %138, %152 : vector<8x256xf32>
    %154 = tpu.reciprocal %153 {approx = true} : vector<8x256xf32> -> vector<8x256xf32>
    %155 = arith.mulf %153, %154 : vector<8x256xf32>
    %cst_10 = arith.constant 2.000000e+00 : f32
    %156 = vector.broadcast %cst_10 : f32 to vector<8x256xf32>
    %157 = arith.subf %156, %155 : vector<8x256xf32>
    %158 = arith.mulf %154, %157 : vector<8x256xf32>
    %159 = arith.mulf %148, %158 : vector<8x256xf32>
    %160 = tpu.concatenate %64, %143, %80, %159 in 0 : vector<8x256xf32>, vector<8x256xf32>, vector<8x256xf32>, vector<8x256xf32> -> vector<32x256xf32>
    %c0_11 = arith.constant 0 : index
    %c0_12 = arith.constant 0 : index
    %161 = vector.load %arg5[%c0_11, %c0_12] : memref<256x1024xf32, #tpu.memory_space<vmem>>, vector<256x1024xf32>
    %cst_13 = arith.constant dense<0.000000e+00> : vector<32x1024xf32>
    %162 = tpu.matmul %160, %161, %cst_13 {dimension_numbers = #tpu.dot_dimension_numbers<[1], [0], [0], [1], [0, 0, 1, 1], [], []>} : vector<32x256xf32>, vector<256x1024xf32>, vector<32x1024xf32> -> vector<32x1024xf32>
    %163 = vector.extract_strided_slice %162 {offsets = [0, 0], sizes = [8, 1024], strides = [1, 1]} : vector<32x1024xf32> to vector<8x1024xf32>
    %c0_14 = arith.constant 0 : index
    %c0_15 = arith.constant 0 : index
    %c0_16 = arith.constant 0 : index
    %164 = vector.load %arg6[%c0_14, %c0_15, %c0_16] : memref<2x8x1024xf32, #tpu.memory_space<vmem>>, vector<1x8x1024xf32>
    %165 = vector.shape_cast %164 : vector<1x8x1024xf32> to vector<8x1024xf32>
    %166 = vector.shape_cast %163 : vector<8x1024xf32> to vector<1x8x1024xf32>
    tpu.vector_store %arg6[%c0_14, %c0_15, %c0_16], %166 {strides = array<i32>} : memref<2x8x1024xf32, #tpu.memory_space<vmem>>, vector<1x8x1024xf32>,
    %167 = vector.extract_strided_slice %162 {offsets = [16, 0], sizes = [8, 1024], strides = [1, 1]} : vector<32x1024xf32> to vector<8x1024xf32>
    %c0_17 = arith.constant 0 : index
    %c0_18 = arith.constant 0 : index
    %c0_19 = arith.constant 0 : index
    %168 = vector.load %arg7[%c0_17, %c0_18, %c0_19] : memref<2x8x1024xf32, #tpu.memory_space<vmem>>, vector<1x8x1024xf32>
    %169 = vector.shape_cast %168 : vector<1x8x1024xf32> to vector<8x1024xf32>
    %170 = vector.shape_cast %167 : vector<8x1024xf32> to vector<1x8x1024xf32>
    tpu.vector_store %arg7[%c0_17, %c0_18, %c0_19], %170 {strides = array<i32>} : memref<2x8x1024xf32, #tpu.memory_space<vmem>>, vector<1x8x1024xf32>,
    %171 = vector.extract_strided_slice %162 {offsets = [8, 0], sizes = [8, 1024], strides = [1, 1]} : vector<32x1024xf32> to vector<8x1024xf32>
    %c1_20 = arith.constant 1 : index
    %c0_21 = arith.constant 0 : index
    %c0_22 = arith.constant 0 : index
    %172 = vector.load %arg6[%c1_20, %c0_21, %c0_22] : memref<2x8x1024xf32, #tpu.memory_space<vmem>>, vector<1x8x1024xf32>
    %173 = vector.shape_cast %172 : vector<1x8x1024xf32> to vector<8x1024xf32>
    %174 = vector.shape_cast %171 : vector<8x1024xf32> to vector<1x8x1024xf32>
    tpu.vector_store %arg6[%c1_20, %c0_21, %c0_22], %174 {strides = array<i32>} : memref<2x8x1024xf32, #tpu.memory_space<vmem>>, vector<1x8x1024xf32>,
    %175 = vector.extract_strided_slice %162 {offsets = [24, 0], sizes = [8, 1024], strides = [1, 1]} : vector<32x1024xf32> to vector<8x1024xf32>
    %c1_23 = arith.constant 1 : index
    %c0_24 = arith.constant 0 : index
    %c0_25 = arith.constant 0 : index
    %176 = vector.load %arg7[%c1_23, %c0_24, %c0_25] : memref<2x8x1024xf32, #tpu.memory_space<vmem>>, vector<1x8x1024xf32>
    %177 = vector.shape_cast %176 : vector<1x8x1024xf32> to vector<8x1024xf32>
    %178 = vector.shape_cast %175 : vector<8x1024xf32> to vector<1x8x1024xf32>
    tpu.vector_store %arg7[%c1_23, %c0_24, %c0_25], %178 {strides = array<i32>} : memref<2x8x1024xf32, #tpu.memory_space<vmem>>, vector<1x8x1024xf32>,
    return
  }
  func.func @transform_0(%arg0: i32) -> (i32, i32, i32) {
    %c0_i32 = arith.constant 0 : i32
    %c0_i32_0 = arith.constant 0 : i32
    %c0_i32_1 = arith.constant 0 : i32
    return %arg0, %c0_i32, %c0_i32_0 : i32, i32, i32
  }
  func.func @transform_1(%arg0: i32) -> (i32, i32) {
    %c0_i32 = arith.constant 0 : i32
    %c0_i32_0 = arith.constant 0 : i32
    %c0_i32_1 = arith.constant 0 : i32
    return %c0_i32, %c0_i32_0 : i32, i32
  }
  func.func @transform_2(%arg0: i32) -> (i32, i32) {
    %c0_i32 = arith.constant 0 : i32
    %c0_i32_0 = arith.constant 0 : i32
    %c0_i32_1 = arith.constant 0 : i32
    return %c0_i32, %c0_i32_0 : i32, i32
  }
  func.func @transform_3(%arg0: i32) -> (i32, i32) {
    %c0_i32 = arith.constant 0 : i32
    %c0_i32_0 = arith.constant 0 : i32
    %c0_i32_1 = arith.constant 0 : i32
    return %c0_i32, %c0_i32_0 : i32, i32
  }
  func.func @transform_4(%arg0: i32) -> (i32, i32) {
    %c0_i32 = arith.constant 0 : i32
    %c0_i32_0 = arith.constant 0 : i32
    %c0_i32_1 = arith.constant 0 : i32
    return %c0_i32, %c0_i32_0 : i32, i32
  }
  func.func @transform_5(%arg0: i32) -> (i32, i32, i32) {
    %c0_i32 = arith.constant 0 : i32
    %c0_i32_0 = arith.constant 0 : i32
    %c0_i32_1 = arith.constant 0 : i32
    return %arg0, %c0_i32, %c0_i32_0 : i32, i32, i32
  }
  func.func @transform_6(%arg0: i32) -> (i32, i32, i32) {
    %c0_i32 = arith.constant 0 : i32
    %c0_i32_0 = arith.constant 0 : i32
    %c0_i32_1 = arith.constant 0 : i32
    return %arg0, %c0_i32, %c0_i32_0 : i32, i32, i32
  }
}

</mosaic_0001>

<bundles_post_ra>
// kernel: tpu_custom_call.1
= control target key start
LH: loop header
LB: loop body
LE: loop exit
PB: predicated region body
PF: predicated region fallthrough
CT: control target
= control target key end

     0   :  { %12 = vsyncpa [#allocation3], 0  ;;  %s2837_s0 = inlined_call_operand.hbm [shape: f32[2,12,256], index: 0, kind: input, shape index: {}]   ;;  %s2838_s1 = inlined_call_operand.hbm [shape: f32[36,8], index: 1, kind: input, shape index: {}]   ;;  %s2839_s2 = inlined_call_operand.hbm [shape: f32[36,1], index: 2, kind: input, shape index: {}]   ;;  %s2840_s3 = inlined_call_operand.hbm [shape: f32[4,4], index: 3, kind: input, shape index: {}]   ;;  %s2841_s4 = inlined_call_operand.hbm [shape: f32[256,1024], index: 4, kind: input, shape index: {}]   ;;  %s2842_s5 = inlined_call_operand.hbm [shape: f32[2,8,1024], index: 5, kind: output, shape index: {0}]   ;;  %s2843_s6 = inlined_call_operand.hbm [shape: f32[2,8,1024], index: 6, kind: output, shape index: {1}]  }
   0x1   :  { %13 = vsyncpa [#allocation6], 0 }
   0x2   :  { %14 = vsyncpa [#allocation9], 0 }
   0x3   :  { %15 = vsyncpa [#allocation4], 0 }
   0x4   :  { %16 = vsyncpa [#allocation13], 0  ;;  %s1977_s21 = smov [#allocation5]   ;;  %s1813_s25 = scalar_lea.hbm %s2838_s1, 640 }
   0x5   :  { %s34_s22 = sshll.u32 %s1977_s21, 4  ;;  %p1814_p0 = scmp.ne.s32.totalorder %s2838_s1, %s1813_s25  ;;  %s35_s22 = int_to_ptr.vmem [resolvable:$true] %s34_s22 }
   0x6   :  { %p1817_p1 = scmp.lt.u32.totalorder %s1813_s25, %s2838_s1 }
   0x8   :  { %p1819_p2 = pnand %p1817_p1, %p1814_p0 }
   0xa   :  { %1822 = shalt.err (!%p1819_p2)
}
   0xb   :  { %s1823_s30 = scalar_lea.vmem %s35_s22, 640  ;;  %p1828_p4 = scmp.lt.s32.totalorder %s35_s22, %s35_s22 }
   0xc   :  { %p1824_p3 = scmp.ne.s32.totalorder %s35_s22, %s1823_s30  ;;  %p1829_p5 = scmp.lt.s32.totalorder %s1823_s30, %s1823_s30 }
   0xe   :  { %p1830_p6 = por %p1829_p5, %p1828_p4 }
  0x10   :  { %p1831_p7 = pnand %p1830_p6, %p1824_p3 }
  0x12   :  { %1834 = shalt.err (!%p1831_p7)
}
  0x13   :  { %s1978_s7 = smov 128   ;;  %s1979_s8 = smov 8  }
  0x14   :  { %40 = dma.hbm_to_vmem [thread:$0]  %s2838_s1, 640, %s35_s22, [#allocation6], %s1978_s7, %s1978_s7, %s1979_s8  }
  0x15   :  { %s1980_s11 = smov [#allocation8]   ;;  %s1981_s13 = smov [#allocation2]  }
  0x16   :  { %s59_s12 = sshll.u32 %s1980_s11, 4  ;;  %s22_s14 = sshll.u32 %s1981_s13, 4  ;;  %s60_s12 = int_to_ptr.vmem [resolvable:$true] %s59_s12  ;;  %s23_s14 = int_to_ptr.vmem [resolvable:$true] %s22_s14 }
  0x17   :  { %s1835_s17 = scalar_lea.hbm %s2840_s3, 64 }
  0x18   :  { %p1836_p8 = scmp.ne.s32.totalorder %s2840_s3, %s1835_s17  ;;  %p1839_p9 = scmp.lt.u32.totalorder %s1835_s17, %s2840_s3 }
  0x1a   :  { %p1841_p10 = pnand %p1839_p9, %p1836_p8 }
  0x1c   :  { %1844 = shalt.err (!%p1841_p10)
}
  0x1d   :  { %s1845_s1 = scalar_lea.vmem %s60_s12, 64  ;;  %p1850_p12 = scmp.lt.s32.totalorder %s60_s12, %s60_s12 }
  0x1e   :  { %p1846_p11 = scmp.ne.s32.totalorder %s60_s12, %s1845_s1  ;;  %p1851_p13 = scmp.lt.s32.totalorder %s1845_s1, %s1845_s1 }
  0x20   :  { %p1852_p0 = por %p1851_p13, %p1850_p12 }
  0x22   :  { %p1853_p1 = pnand %p1852_p0, %p1846_p11 }
  0x24   :  { %1856 = shalt.err (!%p1853_p1)
}
  0x25   :  { %62 = dma.hbm_to_vmem [thread:$0]  %s2840_s3, 64, %s60_s12, [#allocation9]  }
  0x26   :  { %s1857_s26 = scalar_lea.hbm %s2837_s0, 1024 }
  0x27   :  { %p1858_p2 = scmp.ne.s32.totalorder %s2837_s0, %s1857_s26  ;;  %p1861_p3 = scmp.lt.u32.totalorder %s1857_s26, %s2837_s0 }
  0x29   :  { %p1863_p4 = pnand %p1861_p3, %p1858_p2 }
  0x2b   :  { %1866 = shalt.err (!%p1863_p4)
}
  0x2c   :  { %s1867_s9 = scalar_lea.vmem %s23_s14, 1024  ;;  %p1872_p6 = scmp.lt.s32.totalorder %s23_s14, %s23_s14 }
  0x2d   :  { %p1868_p5 = scmp.ne.s32.totalorder %s23_s14, %s1867_s9  ;;  %p1873_p7 = scmp.lt.s32.totalorder %s1867_s9, %s1867_s9 }
  0x2f   :  { %p1874_p8 = por %p1873_p7, %p1872_p6 }
  0x31   :  { %p1875_p9 = pnand %p1874_p8, %p1868_p5 }
  0x33   :  { %1878 = shalt.err (!%p1875_p9)
}
  0x34   :  { %s1982_s3 = smov 256   ;;  %s1983_s10 = smov 16  }
  0x35   :  { %28 = dma.hbm_to_vmem [thread:$0]  %s2837_s0, 1024, %s23_s14, [#allocation3], %s1982_s3, %s1982_s3, %s1983_s10  }
  0x36   :  { %s1984_s13 = smov [#allocation7]   ;;  %s1985_s16 = smov [#allocation10]  }
  0x37   :  { %s46_s15 = sshll.u32 %s1984_s13, 4  ;;  %s68_s17 = sshll.u32 %s1985_s16, 4  ;;  %s47_s15 = int_to_ptr.vmem [resolvable:$true] %s46_s15  ;;  %s69_s17 = int_to_ptr.vmem [resolvable:$true] %s68_s17 }
  0x38   :  { %s1879_s20 = scalar_lea.hbm %s2839_s2, 640 }
  0x39   :  { %p1880_p10 = scmp.ne.s32.totalorder %s2839_s2, %s1879_s20  ;;  %p1883_p11 = scmp.lt.u32.totalorder %s1879_s20, %s2839_s2 }
  0x3b   :  { %p1885_p12 = pnand %p1883_p11, %p1880_p10 }
  0x3d   :  { %1888 = shalt.err (!%p1885_p12)
}
  0x3e   :  { %s1889_s0 = scalar_lea.vmem %s47_s15, 640  ;;  %p1894_p0 = scmp.lt.s32.totalorder %s47_s15, %s47_s15 }
  0x3f   :  { %p1890_p13 = scmp.ne.s32.totalorder %s47_s15, %s1889_s0  ;;  %p1895_p1 = scmp.lt.s32.totalorder %s1889_s0, %s1889_s0 }
  0x41   :  { %p1896_p2 = por %p1895_p1, %p1894_p0 }
  0x43   :  { %p1897_p3 = pnand %p1896_p2, %p1890_p13 }
  0x45   :  { %1900 = shalt.err (!%p1897_p3)
}
  0x46   :  { %52 = dma.hbm_to_vmem [thread:$0]  %s2839_s2, 640, %s47_s15, [#allocation6], %s1978_s7, %s1978_s7, %s1979_s8  }
  0x47   :  { %s1901_s27 = scalar_lea.hbm %s2841_s4, 32768 }
  0x48   :  { %p1902_p4 = scmp.ne.s32.totalorder %s2841_s4, %s1901_s27  ;;  %p1905_p5 = scmp.lt.u32.totalorder %s1901_s27, %s2841_s4 }
  0x4a   :  { %p1907_p6 = pnand %p1905_p5, %p1902_p4 }
  0x4c   :  { %1910 = shalt.err (!%p1907_p6)
}
  0x4d   :  { %s1911_s3 = scalar_lea.vmem %s69_s17, 32768  ;;  %p1916_p8 = scmp.lt.s32.totalorder %s69_s17, %s69_s17 }
  0x4e   :  { %p1912_p7 = scmp.ne.s32.totalorder %s69_s17, %s1911_s3  ;;  %p1917_p9 = scmp.lt.s32.totalorder %s1911_s3, %s1911_s3 }
  0x50   :  { %p1918_p10 = por %p1917_p9, %p1916_p8 }
  0x52   :  { %p1919_p11 = pnand %p1918_p10, %p1912_p7 }
  0x54   :  { %1922 = shalt.err (!%p1919_p11)
}
  0x55   :  { %s1986_s2 = smov 1024   ;;  %s1987_s7 = smov 64  }
  0x56   :  { %74 = dma.hbm_to_vmem [thread:$0]  %s2841_s4, 32768, %s69_s17, [#allocation9], %s1986_s2, %s1986_s2, %s1987_s7  }
  0x57   :  { %1967 = dma.done.wait [#allocation3], 1024  }
  0x58   :  { %1968 = vsyncadd [#allocation3], 4294966272 }
  0x59   :  { %1969 = dma.done.wait [#allocation6], 1280  }
  0x5a   :  { %1970 = vsyncadd [#allocation6], 4294966016 }
  0x5b   :  { %1971 = dma.done.wait [#allocation9], 32832  }
  0x5c   :  { %1972 = vsyncadd [#allocation9], 4294934464  ;;  %v1988_v0 = vmov 0.0   ;;  %v1989_v1 = vmov 0   ;;  %v2098_v2 = vld [vmem:[#allocation2 + $0x8] sm:$0xff]  ;;  %v2102_v4 = vld [vmem:[#allocation2] sm:$0xff] }
  0x5d   :  { %209 = vmatprep.mubr.f32.mxu0 %v1988_v0  ;;  %531 = vmatprep.mubr.f32.mxu1 %v1988_v0  ;;  %v2100_v3 = vld [vmem:[#allocation2 + $0x28] sm:$0xff]  ;;  %vm129_vm0 = vcmask 64512   ;;  %v2106_v5 = vld [vmem:[#allocation2 + $0x20] sm:$0xff]  ;;  %v97_v9 = vld [vmem:[#allocation7 + $0x10] sm:$0xff]  ;;  %vm788_vm1 = vcmask 1043456   ;;  %s1990_s4 = smov [#allocation11]  }
  0x5e   :  { %1795 = vset.pattern.permute.xlu0 %v1989_v1  ;;  %1796 = vset.pattern.permute.xlu1 %v1989_v1  ;;  %v90_v6 = vld [vmem:[#allocation5] sm:$0xff]  ;;  %v91_v7 = vld [vmem:[#allocation5 + $0x8] sm:$0xff]  ;;  %v96_v10 = vld [vmem:[#allocation7 + $0x8] sm:$0xff]  ;;  %s1484_s11 = sshll.u32 %s1990_s4, 4  ;;  %s1485_s11 = int_to_ptr.vmem [resolvable:$true] %s1484_s11 }
  0x5f   :  { %145 = vmatprep.subr.mxu0 %v2098_v2  ;;  %467 = vmatprep.subr.mxu1 %v2100_v3  ;;  %v95_v8 = vld [vmem:[#allocation7] sm:$0xff]  ;;  %v98_v11 = vld [vmem:[#allocation7 + $0x18] sm:$0xff]  ;;  %v833_v18 = vld [vmem:[#allocation10] sm:$0xff]  ;;  %s1923_s12 = scalar_lea.vmem %s1485_s11, 2048  ;;  %p1928_p13 = scmp.lt.s32.totalorder %s1485_s11, %s1485_s11 }
  0x60   :  { %146 = vmatpush1.msra.mxu0 %v2102_v4  ;;  %468 = vmatpush1.msra.mxu1 %v2106_v5  ;;  %v834_v12 = vld [vmem:[#allocation10 + $0x8] sm:$0xff]  ;;  %v836_v14 = vld [vmem:[#allocation10 + $0x18] sm:$0xff]  ;;  %v841_v19 = vld [vmem:[#allocation10 + $0x40] sm:$0xff]  ;;  %p1924_p12 = scmp.ne.s32.totalorder %s1485_s11, %s1923_s12  ;;  %p1929_p0 = scmp.lt.s32.totalorder %s1923_s12, %s1923_s12 }
  0x61   :  { %1514 = vmatmul.mubr.msk.f32.vlgmr.msra.gmra.mrb[0].mxu0 %vm129_vm0, %v90_v6  ;;  %1519 = vmatmul.mubr.msk.f32.vlgmr.msra.gmra.mrb[0].mxu1 %vm129_vm0, %v90_v6  ;;  %v842_v13 = vld [vmem:[#allocation10 + $0x48] sm:$0xff]  ;;  %v844_v15 = vld [vmem:[#allocation10 + $0x58] sm:$0xff]  ;;  %v835_v20 = vld [vmem:[#allocation10 + $0x10] sm:$0xff]  ;;  %v1526_v26 = vpack.c.bf16 %v841_v19, %v833_v18 }
  0x62   :  { %215 = vmatprep.mubr.f32.mxu0 %v1988_v0  ;;  %537 = vmatprep.mubr.f32.mxu1 %v1988_v0  ;;  %v1524_v16 = vpack.c.bf16 %v842_v13, %v834_v12  ;;  %v1588_v17 = vpack.c.bf16 %v844_v15, %v836_v14  ;;  %v843_v21 = vld [vmem:[#allocation10 + $0x50] sm:$0xff]  ;;  %v850_v22 = vld [vmem:[#allocation10 + $0x88] sm:$0xff]  ;;  %v92_v24 = vld [vmem:[#allocation5 + $0x10] sm:$0xff]  ;;  %p1930_p1 = por %p1929_p0, %p1928_p13 }
  0x63   :  { %106 = vperm.xlu0 %1795, %v95_v8   ;;  %116 = vperm.xlu1 %1796, %v97_v9   ;;  %v858_v23 = vld [vmem:[#allocation10 + $0xc8] sm:$0xff]  ;;  %v99_v25 = vld [vmem:[#allocation7 + $0x20] sm:$0xf]  ;;  %v852_v27 = vld [vmem:[#allocation10 + $0x98] sm:$0xff]  ;;  %v1590_v29 = vpack.c.bf16 %v843_v21, %v835_v20 }
  0x64   :  { %v860_v28 = vld [vmem:[#allocation10 + $0xd8] sm:$0xff]  ;;  %1525 = vmatprep.subr.bf16.mxu0 %v1524_v16  ;;  %1589 = vmatprep.subr.bf16.mxu1 %v1588_v17  ;;  %v1528_v30 = vpack.c.bf16 %v858_v23, %v850_v22  ;;  %v849_v31 = vld [vmem:[#allocation10 + $0x80] sm:$0xff]  ;;  %v851_v33 = vld [vmem:[#allocation10 + $0x90] sm:$0xff]  ;;  %p1931_p2 = pnand %p1930_p1, %p1924_p12 }
  0x65   :  { %1515 = vmatmul.mubr.msk.f32.gmra.mrb[2].mxu0 %vm129_vm0, %v91_v7  ;;  %1520 = vmatmul.mubr.msk.f32.gmra.mrb[2].mxu1 %vm129_vm0, %v91_v7  ;;  %v857_v32 = vld [vmem:[#allocation10 + $0xc0] sm:$0xff]  ;;  %v859_v34 = vld [vmem:[#allocation10 + $0xd0] sm:$0xff]  ;;  %v866_v35 = vld [vmem:[#allocation10 + $0x108] sm:$0xff]  ;;  %v1592_v38 = vpack.c.bf16 %v860_v28, %v852_v27 }
  0x66   :  { %221 = vmatprep.mubr.f32.mxu0 %v1988_v0  ;;  %543 = vmatprep.mubr.f32.mxu1 %v1988_v0  ;;  %v874_v36 = vld [vmem:[#allocation10 + $0x148] sm:$0xff]  ;;  %v1530_v39 = vpack.c.bf16 %v857_v32, %v849_v31  ;;  %v868_v40 = vld [vmem:[#allocation10 + $0x118] sm:$0xff]  ;;  %v1594_v42 = vpack.c.bf16 %v859_v34, %v851_v33  ;;  %v865_v44 = vld [vmem:[#allocation10 + $0x100] sm:$0xff] }
  0x67   :  { %111 = vperm.xlu0 %1795, %v96_v10   ;;  %121 = vperm.xlu1 %1796, %v98_v11   ;;  %v93_v37 = vld [vmem:[#allocation5 + $0x18] sm:$0xff]  ;;  %v876_v41 = vld [vmem:[#allocation10 + $0x158] sm:$0xff]  ;;  %v1532_v43 = vpack.c.bf16 %v874_v36, %v866_v35  ;;  %v867_v46 = vld [vmem:[#allocation10 + $0x110] sm:$0xff] }
  0x68   :  { %1527 = vmatpush1.bf16.msra.mxu0 %v1526_v26  ;;  %1591 = vmatpush1.bf16.msra.mxu1 %v1590_v29  ;;  %v873_v45 = vld [vmem:[#allocation10 + $0x140] sm:$0xff]  ;;  %v875_v47 = vld [vmem:[#allocation10 + $0x150] sm:$0xff]  ;;  %v882_v48 = vld [vmem:[#allocation10 + $0x188] sm:$0xff]  ;;  %v1596_v51 = vpack.c.bf16 %v876_v41, %v868_v40 }
  0x69   :  { %1516 = vmatmul.mubr.msk.f32.gmra.mrb[4].mxu0 %vm129_vm0, %v92_v24  ;;  %1521 = vmatmul.mubr.msk.f32.gmra.mrb[4].mxu1 %vm129_vm0, %v92_v24  ;;  %v890_v49 = vld [vmem:[#allocation10 + $0x1c8] sm:$0xff]  ;;  %v884_v52 = vld [vmem:[#allocation10 + $0x198] sm:$0xff]  ;;  %v1534_v54 = vpack.c.bf16 %v873_v45, %v865_v44  ;;  %v1598_v55 = vpack.c.bf16 %v875_v47, %v867_v46  ;;  %v881_v57 = vld [vmem:[#allocation10 + $0x180] sm:$0xff] }
  0x6a   :  { %227 = vmatprep.mubr.f32.mxu0 %v1988_v0  ;;  %549 = vmatprep.mubr.f32.mxu1 %v1988_v0  ;;  %v94_v50 = vld [vmem:[#allocation5 + $0x20] sm:$0xf]  ;;  %v892_v53 = vld [vmem:[#allocation10 + $0x1d8] sm:$0xff]  ;;  %v1536_v56 = vpack.c.bf16 %v890_v49, %v882_v48  ;;  %v889_v58 = vld [vmem:[#allocation10 + $0x1c0] sm:$0xff] }
  0x6b   :  { %126 = vperm.xlu0 %1795, %v99_v25   ;;  %1529 = vmatprep.subr.bf16.mxu0 %v1528_v30  ;;  %v883_v59 = vld [vmem:[#allocation10 + $0x190] sm:$0xff]  ;;  %v1600_v60 = vpack.c.bf16 %v892_v53, %v884_v52  ;;  %v898_v62 = vld [vmem:[#allocation10 + $0x208] sm:$0xff]  ;;  %v908_v1 = vld [vmem:[#allocation10 + $0x258] sm:$0xff]  ;;  %v1538_v6 = vpack.c.bf16 %v889_v58, %v881_v57 }
  0x6c   :  { %1593 = vmatprep.subr.bf16.mxu1 %v1592_v38  ;;  %1531 = vmatpush1.bf16.msra.mxu0 %v1530_v39  ;;  %v891_v61 = vld [vmem:[#allocation10 + $0x1d0] sm:$0xff]  ;;  %v906_v63 = vld [vmem:[#allocation10 + $0x248] sm:$0xff]  ;;  %v897_v9 = vld [vmem:[#allocation10 + $0x200] sm:$0xff] }
  0x6d   :  { %1517 = vmatmul.mubr.msk.f32.gmra.mrb[6].mxu0 %vm129_vm0, %v93_v37  ;;  %1522 = vmatmul.mubr.msk.f32.gmra.mrb[6].mxu1 %vm129_vm0, %v93_v37  ;;  %v1602_v7 = vpack.c.bf16 %v891_v61, %v883_v59  ;;  %v1540_v8 = vpack.c.bf16 %v906_v63, %v898_v62  ;;  %v905_v10 = vld [vmem:[#allocation10 + $0x240] sm:$0xff]  ;;  %v899_v11 = vld [vmem:[#allocation10 + $0x210] sm:$0xff]  ;;  %v914_v14 = vld [vmem:[#allocation10 + $0x288] sm:$0xff] }
  0x6e   :  { %233 = vmatprep.mubr.f32.mxu0 %v1988_v0  ;;  %555 = vmatprep.mubr.f32.mxu1 %v1988_v0  ;;  %v900_v0 = vld [vmem:[#allocation10 + $0x218] sm:$0xff]  ;;  %v907_v13 = vld [vmem:[#allocation10 + $0x250] sm:$0xff]  ;;  %v922_v15 = vld [vmem:[#allocation10 + $0x2c8] sm:$0xff]  ;;  %v1542_v18 = vpack.c.bf16 %v905_v10, %v897_v9 }
  0x6f   :  { %1595 = vmatpush1.bf16.msra.mxu1 %v1594_v42  ;;  %1533 = vmatprep.subr.bf16.mxu0 %v1532_v43  ;;  %v1604_v12 = vpack.c.bf16 %v908_v1, %v900_v0  ;;  %v916_v16 = vld [vmem:[#allocation10 + $0x298] sm:$0xff]  ;;  %v1606_v19 = vpack.c.bf16 %v907_v13, %v899_v11  ;;  %v1544_v20 = vpack.c.bf16 %v922_v15, %v914_v14  ;;  %v913_v21 = vld [vmem:[#allocation10 + $0x280] sm:$0xff]  ;;  %v915_v23 = vld [vmem:[#allocation10 + $0x290] sm:$0xff] }
  0x70   :  { %1597 = vmatprep.subr.bf16.mxu1 %v1596_v51  ;;  %1535 = vmatpush1.bf16.msra.mxu0 %v1534_v54  ;;  %v924_v17 = vld [vmem:[#allocation10 + $0x2d8] sm:$0xff]  ;;  %v921_v22 = vld [vmem:[#allocation10 + $0x2c0] sm:$0xff]  ;;  %v923_v25 = vld [vmem:[#allocation10 + $0x2d0] sm:$0xff] }
  0x71   :  { %1518 = vmatmul.mubr.msk.f32.gmra.mrb[8].mxu0 %vm129_vm0, %v94_v50  ;;  %1523 = vmatmul.mubr.msk.f32.gmra.mrb[8].mxu1 %vm129_vm0, %v94_v50  ;;  %v1608_v24 = vpack.c.bf16 %v924_v17, %v916_v16  ;;  %v930_v26 = vld [vmem:[#allocation10 + $0x308] sm:$0xff]  ;;  %v932_v28 = vld [vmem:[#allocation10 + $0x318] sm:$0xff]  ;;  %v1546_v30 = vpack.c.bf16 %v921_v22, %v913_v21  ;;  %v1610_v31 = vpack.c.bf16 %v923_v25, %v915_v23  ;;  %v929_v33 = vld [vmem:[#allocation10 + $0x300] sm:$0xff] }
  0x72   :  { %1537 = vmatprep.subr.bf16.mxu0 %v1536_v56  ;;  %v938_v27 = vld [vmem:[#allocation10 + $0x348] sm:$0xff]  ;;  %v940_v29 = vld [vmem:[#allocation10 + $0x358] sm:$0xff]  ;;  %v937_v34 = vld [vmem:[#allocation10 + $0x340] sm:$0xff] }
  0x73   :  { %1599 = vmatpush1.bf16.msra.mxu1 %v1598_v55  ;;  %v1548_v32 = vpack.c.bf16 %v938_v27, %v930_v26  ;;  %v931_v35 = vld [vmem:[#allocation10 + $0x310] sm:$0xff]  ;;  %v1612_v36 = vpack.c.bf16 %v940_v29, %v932_v28  ;;  %v946_v38 = vld [vmem:[#allocation10 + $0x388] sm:$0xff]  ;;  %v948_v40 = vld [vmem:[#allocation10 + $0x398] sm:$0xff]  ;;  %v1550_v42 = vpack.c.bf16 %v937_v34, %v929_v33 }
  0x74   :  { %1601 = vmatprep.subr.bf16.mxu1 %v1600_v60  ;;  %1539 = vmatpush1.bf16.msra.mxu0 %v1538_v6  ;;  %v939_v37 = vld [vmem:[#allocation10 + $0x350] sm:$0xff]  ;;  %v954_v39 = vld [vmem:[#allocation10 + $0x3c8] sm:$0xff]  ;;  %v956_v41 = vld [vmem:[#allocation10 + $0x3d8] sm:$0xff] }
  0x75   :  { %1541 = vmatprep.subr.bf16.mxu0 %v1540_v8  ;;  %v1614_v43 = vpack.c.bf16 %v939_v37, %v931_v35  ;;  %v1552_v44 = vpack.c.bf16 %v954_v39, %v946_v38  ;;  %v945_v45 = vld [vmem:[#allocation10 + $0x380] sm:$0xff]  ;;  %v947_v47 = vld [vmem:[#allocation10 + $0x390] sm:$0xff]  ;;  %v1616_v48 = vpack.c.bf16 %v956_v41, %v948_v40  ;;  %v962_v50 = vld [vmem:[#allocation10 + $0x408] sm:$0xff] }
  0x76   :  { %v953_v46 = vld [vmem:[#allocation10 + $0x3c0] sm:$0xff]  ;;  %v955_v49 = vld [vmem:[#allocation10 + $0x3d0] sm:$0xff]  ;;  %v970_v51 = vld [vmem:[#allocation10 + $0x448] sm:$0xff] }
  0x77   :  { %1603 = vmatpush1.bf16.msra.mxu1 %v1602_v7  ;;  %v964_v52 = vld [vmem:[#allocation10 + $0x418] sm:$0xff]  ;;  %v1554_v54 = vpack.c.bf16 %v953_v46, %v945_v45  ;;  %v1618_v55 = vpack.c.bf16 %v955_v49, %v947_v47  ;;  %v1556_v56 = vpack.c.bf16 %v970_v51, %v962_v50  ;;  %v961_v57 = vld [vmem:[#allocation10 + $0x400] sm:$0xff]  ;;  %v963_v59 = vld [vmem:[#allocation10 + $0x410] sm:$0xff] }
  0x78   :  { %1605 = vmatprep.subr.bf16.mxu1 %v1604_v12  ;;  %1543 = vmatpush1.bf16.msra.mxu0 %v1542_v18  ;;  %v972_v53 = vld [vmem:[#allocation10 + $0x458] sm:$0xff]  ;;  %v969_v58 = vld [vmem:[#allocation10 + $0x440] sm:$0xff]  ;;  %v971_v61 = vld [vmem:[#allocation10 + $0x450] sm:$0xff] }
  0x79   :  { %1545 = vmatprep.subr.bf16.mxu0 %v1544_v20  ;;  %v1620_v60 = vpack.c.bf16 %v972_v53, %v964_v52  ;;  %v978_v62 = vld [vmem:[#allocation10 + $0x488] sm:$0xff]  ;;  %v980_v0 = vld [vmem:[#allocation10 + $0x498] sm:$0xff]  ;;  %v1558_v6 = vpack.c.bf16 %v969_v58, %v961_v57  ;;  %v1622_v7 = vpack.c.bf16 %v971_v61, %v963_v59  ;;  %v977_v10 = vld [vmem:[#allocation10 + $0x480] sm:$0xff] }
  0x7a   :  { %v986_v63 = vld [vmem:[#allocation10 + $0x4c8] sm:$0xff]  ;;  %v988_v1 = vld [vmem:[#allocation10 + $0x4d8] sm:$0xff]  ;;  %v985_v11 = vld [vmem:[#allocation10 + $0x4c0] sm:$0xff] }
  0x7b   :  { %1607 = vmatpush1.bf16.msra.mxu1 %v1606_v19  ;;  %v1560_v8 = vpack.c.bf16 %v986_v63, %v978_v62  ;;  %v1624_v9 = vpack.c.bf16 %v988_v1, %v980_v0  ;;  %v979_v12 = vld [vmem:[#allocation10 + $0x490] sm:$0xff]  ;;  %v1562_v13 = vpack.c.bf16 %v985_v11, %v977_v10  ;;  %v994_v16 = vld [vmem:[#allocation10 + $0x508] sm:$0xff]  ;;  %v996_v18 = vld [vmem:[#allocation10 + $0x518] sm:$0xff] }
  0x7c   :  { %1609 = vmatprep.subr.bf16.mxu1 %v1608_v24  ;;  %1547 = vmatpush1.bf16.msra.mxu0 %v1546_v30  ;;  %v987_v14 = vld [vmem:[#allocation10 + $0x4d0] sm:$0xff]  ;;  %v1002_v17 = vld [vmem:[#allocation10 + $0x548] sm:$0xff]  ;;  %v1004_v20 = vld [vmem:[#allocation10 + $0x558] sm:$0xff] }
  0x7d   :  { %1549 = vmatprep.subr.bf16.mxu0 %v1548_v32  ;;  %v1626_v15 = vpack.c.bf16 %v987_v14, %v979_v12  ;;  %v1564_v19 = vpack.c.bf16 %v1002_v17, %v994_v16  ;;  %v1628_v21 = vpack.c.bf16 %v1004_v20, %v996_v18  ;;  %v993_v22 = vld [vmem:[#allocation10 + $0x500] sm:$0xff]  ;;  %v995_v25 = vld [vmem:[#allocation10 + $0x510] sm:$0xff]  ;;  %v1010_v28 = vld [vmem:[#allocation10 + $0x588] sm:$0xff] }
  0x7e   :  { %v1001_v23 = vld [vmem:[#allocation10 + $0x540] sm:$0xff]  ;;  %v1003_v26 = vld [vmem:[#allocation10 + $0x550] sm:$0xff]  ;;  %v1018_v29 = vld [vmem:[#allocation10 + $0x5c8] sm:$0xff] }
  0x7f   :  { %1611 = vmatpush1.bf16.msra.mxu1 %v1610_v31  ;;  %v1566_v24 = vpack.c.bf16 %v1001_v23, %v993_v22  ;;  %v1630_v27 = vpack.c.bf16 %v1003_v26, %v995_v25  ;;  %v1012_v30 = vld [vmem:[#allocation10 + $0x598] sm:$0xff]  ;;  %v1568_v31 = vpack.c.bf16 %v1018_v29, %v1010_v28  ;;  %v1009_v34 = vld [vmem:[#allocation10 + $0x580] sm:$0xff]  ;;  %v1019_v38 = vld [vmem:[#allocation10 + $0x5d0] sm:$0xff] }
  0x80   :  { %1613 = vmatprep.subr.bf16.mxu1 %v1612_v36  ;;  %1551 = vmatpush1.bf16.msra.mxu0 %v1550_v42  ;;  %v1020_v32 = vld [vmem:[#allocation10 + $0x5d8] sm:$0xff]  ;;  %v1017_v35 = vld [vmem:[#allocation10 + $0x5c0] sm:$0xff]  ;;  %v1011_v36 = vld [vmem:[#allocation10 + $0x590] sm:$0xff] }
  0x81   :  { %1553 = vmatprep.subr.bf16.mxu0 %v1552_v44  ;;  %v1632_v33 = vpack.c.bf16 %v1020_v32, %v1012_v30  ;;  %v1570_v37 = vpack.c.bf16 %v1017_v35, %v1009_v34  ;;  %v1634_v39 = vpack.c.bf16 %v1019_v38, %v1011_v36  ;;  %v1026_v40 = vld [vmem:[#allocation10 + $0x608] sm:$0xff]  ;;  %v1028_v42 = vld [vmem:[#allocation10 + $0x618] sm:$0xff]  ;;  %v1025_v45 = vld [vmem:[#allocation10 + $0x600] sm:$0xff]  ;;  %v262_v34 = vlaneseq }
  0x82   :  { %v1034_v41 = vld [vmem:[#allocation10 + $0x648] sm:$0xff]  ;;  %v1036_v44 = vld [vmem:[#allocation10 + $0x658] sm:$0xff]  ;;  %v1033_v46 = vld [vmem:[#allocation10 + $0x640] sm:$0xff] }
  0x83   :  { %1615 = vmatpush1.bf16.msra.mxu1 %v1614_v43  ;;  %v1572_v43 = vpack.c.bf16 %v1034_v41, %v1026_v40  ;;  %v1636_v47 = vpack.c.bf16 %v1036_v44, %v1028_v42  ;;  %v1027_v49 = vld [vmem:[#allocation10 + $0x610] sm:$0xff]  ;;  %v1042_v52 = vld [vmem:[#allocation10 + $0x688] sm:$0xff]  ;;  %v1041_v58 = vld [vmem:[#allocation10 + $0x680] sm:$0xff]  ;;  %v263_v35 = vshrl.u32 %v262_v34, 7 }
  0x84   :  { %1617 = vmatprep.subr.bf16.mxu1 %v1616_v48  ;;  %1555 = vmatpush1.bf16.msra.mxu0 %v1554_v54  ;;  %v1574_v48 = vpack.c.bf16 %v1033_v46, %v1025_v45  ;;  %v1035_v50 = vld [vmem:[#allocation10 + $0x650] sm:$0xff]  ;;  %v1050_v53 = vld [vmem:[#allocation10 + $0x6c8] sm:$0xff]  ;;  %v1044_v54 = vld [vmem:[#allocation10 + $0x698] sm:$0xff] }
  0x85   :  { %1557 = vmatprep.subr.bf16.mxu0 %v1556_v56  ;;  %v1638_v51 = vpack.c.bf16 %v1035_v50, %v1027_v49  ;;  %v1052_v56 = vld [vmem:[#allocation10 + $0x6d8] sm:$0xff]  ;;  %v1049_v59 = vld [vmem:[#allocation10 + $0x6c0] sm:$0xff]  ;;  %v1051_v62 = vld [vmem:[#allocation10 + $0x6d0] sm:$0xff]  ;;  %v2154_v49 = vsub.s32 1, %v263_v35 }
  0x86   :  { %v1640_v57 = vpack.c.bf16 %v1052_v56, %v1044_v54  ;;  %v1578_v61 = vpack.c.bf16 %v1049_v59, %v1041_v58  ;;  %v1058_v0 = vld [vmem:[#allocation10 + $0x708] sm:$0xff]  ;;  %v1065_v10 = vld [vmem:[#allocation10 + $0x740] sm:$0xff]  ;;  %v1067_v14 = vld [vmem:[#allocation10 + $0x750] sm:$0xff]  ;;  %v2162_v54 = vsub.s32 5, %v263_v35  ;;  %v2166_v56 = vsub.s32 6, %v263_v35 }
  0x87   :  { %1619 = vmatpush1.bf16.msra.mxu1 %v1618_v55  ;;  %v1576_v55 = vpack.c.bf16 %v1050_v53, %v1042_v52  ;;  %v1066_v1 = vld [vmem:[#allocation10 + $0x748] sm:$0xff]  ;;  %v1076_v18 = vld [vmem:[#allocation10 + $0x798] sm:$0xff]  ;;  %v1081_v22 = vld [vmem:[#allocation10 + $0x7c0] sm:$0xff] }
  0x88   :  { %1621 = vmatprep.subr.bf16.mxu1 %v1620_v60  ;;  %1559 = vmatpush1.bf16.msra.mxu0 %v1558_v6  ;;  %v1043_v60 = vld [vmem:[#allocation10 + $0x690] sm:$0xff]  ;;  %v1060_v6 = vld [vmem:[#allocation10 + $0x718] sm:$0xff]  ;;  %v1074_v16 = vld [vmem:[#allocation10 + $0x788] sm:$0xff] }
  0x89   :  { %1561 = vmatprep.subr.bf16.mxu0 %v1560_v8  ;;  %v1642_v63 = vpack.c.bf16 %v1051_v62, %v1043_v60  ;;  %v1068_v8 = vld [vmem:[#allocation10 + $0x758] sm:$0xff]  ;;  %v1082_v17 = vld [vmem:[#allocation10 + $0x7c8] sm:$0xff]  ;;  %v1075_v25 = vld [vmem:[#allocation10 + $0x790] sm:$0xff]  ;;  %v2174_v60 = vsub.s32 3, %v263_v35 }
  0x8a   :  { %v1644_v11 = vpack.c.bf16 %v1068_v8, %v1060_v6  ;;  %v1084_v20 = vld [vmem:[#allocation10 + $0x7d8] sm:$0xff]  ;;  %v1083_v26 = vld [vmem:[#allocation10 + $0x7d0] sm:$0xff]  ;;  %v838_v28 = vld [vmem:[#allocation10 + $0x28] sm:$0xff] }
  0x8b   :  { %1623 = vmatpush1.bf16.msra.mxu1 %v1622_v7  ;;  %v1580_v7 = vpack.c.bf16 %v1066_v1, %v1058_v0  ;;  %v1648_v23 = vpack.c.bf16 %v1084_v20, %v1076_v18  ;;  %v846_v29 = vld [vmem:[#allocation10 + $0x68] sm:$0xff]  ;;  %v840_v30 = vld [vmem:[#allocation10 + $0x38] sm:$0xff]  ;;  %v2128_v36 = vld [vmem:[#allocation10 + $0x20] sm:$0xff] }
  0x8c   :  { %1625 = vmatprep.subr.bf16.mxu1 %v1624_v9  ;;  %1563 = vmatpush1.bf16.msra.mxu0 %v1562_v13  ;;  %v1057_v9 = vld [vmem:[#allocation10 + $0x700] sm:$0xff]  ;;  %v1059_v13 = vld [vmem:[#allocation10 + $0x710] sm:$0xff]  ;;  %v848_v32 = vld [vmem:[#allocation10 + $0x78] sm:$0xff]  ;;  %2890 = vst [vmem:[#allocation19_spill] sm:$0xff] %v2128_v36 }
  0x8d   :  { %1565 = vmatprep.subr.bf16.mxu0 %v1564_v19  ;;  %v1582_v12 = vpack.c.bf16 %v1065_v10, %v1057_v9  ;;  %v1584_v19 = vpack.c.bf16 %v1082_v17, %v1074_v16  ;;  %v2132_v38 = vld [vmem:[#allocation10 + $0x30] sm:$0xff]  ;;  %v2136_v40 = vld [vmem:[#allocation10 + $0xa8] sm:$0xff]  ;;  %v2140_v42 = vld [vmem:[#allocation10 + $0xb8] sm:$0xff] }
  0x8e   :  { %2892 = vst [vmem:[#allocation21_spill] sm:$0xff] %v2132_v38  ;;  %2894 = vst [vmem:[#allocation23_spill] sm:$0xff] %v2136_v40  ;;  %v2138_v41 = vld [vmem:[#allocation10 + $0xe8] sm:$0xff]  ;;  %v2144_v44 = vld [vmem:[#allocation10 + $0xa0] sm:$0xff] }
  0x8f   :  { %1627 = vmatpush1.bf16.msra.mxu1 %v1626_v15  ;;  %v1646_v15 = vpack.c.bf16 %v1067_v14, %v1059_v13  ;;  %2895 = vst [vmem:[#allocation24_spill] sm:$0xff] %v2138_v41  ;;  %2896 = vst [vmem:[#allocation25_spill] sm:$0xff] %v2140_v42  ;;  %v2146_v45 = vld [vmem:[#allocation10 + $0xe0] sm:$0xff]  ;;  %v2148_v46 = vld [vmem:[#allocation10 + $0xb0] sm:$0xff] }
  0x90   :  { %1629 = vmatprep.subr.bf16.mxu1 %v1628_v21  ;;  %1567 = vmatpush1.bf16.msra.mxu0 %v1566_v24  ;;  %v1073_v21 = vld [vmem:[#allocation10 + $0x780] sm:$0xff]  ;;  %2898 = vst [vmem:[#allocation27_spill] sm:$0xff] %v2144_v44  ;;  %2899 = vst [vmem:[#allocation28_spill] sm:$0xff] %v2146_v45  ;;  %v2156_v50 = vld [vmem:[#allocation10 + $0xf0] sm:$0xff] }
  0x91   :  { %1569 = vmatprep.subr.bf16.mxu0 %v1568_v31  ;;  %v1586_v24 = vpack.c.bf16 %v1081_v22, %v1073_v21  ;;  %v1652_v31 = vpack.c.bf16 %v846_v29, %v838_v28  ;;  %2900 = vst [vmem:[#allocation29_spill] sm:$0xff] %v2148_v46  ;;  %2901 = vst [vmem:[#allocation30_spill] sm:$0xff] %v2156_v50  ;;  %v2160_v52 = vld [vmem:[#allocation10 + $0x168] sm:$0xff]  ;;  %v2170_v58 = vld [vmem:[#allocation10 + $0x178] sm:$0xff] }
  0x92   :  { %2903 = vst [vmem:[#allocation32_spill] sm:$0xff] %v2160_v52  ;;  %2905 = vst [vmem:[#allocation34_spill] sm:$0xff] %v2170_v58  ;;  %v2172_v59 = vld [vmem:[#allocation10 + $0x120] sm:$0xff]  ;;  %v2184_v1 = vld [vmem:[#allocation10 + $0x130] sm:$0xff] }
  0x93   :  { %1631 = vmatpush1.bf16.msra.mxu1 %v1630_v27  ;;  %v1650_v27 = vpack.c.bf16 %v1083_v26, %v1075_v25  ;;  %2906 = vst [vmem:[#allocation35_spill] sm:$0xff] %v2172_v59  ;;  %v2182_v0 = vld [vmem:[#allocation10 + $0x160] sm:$0xff]  ;;  %2908 = vst [vmem:[#allocation37_spill] sm:$0xff] %v2184_v1  ;;  %v2186_v6 = vld [vmem:[#allocation10 + $0x170] sm:$0xff] }
  0x94   :  { %1633 = vmatprep.subr.bf16.mxu1 %v1632_v33  ;;  %1571 = vmatpush1.bf16.msra.mxu0 %v1570_v37  ;;  %v1716_v33 = vpack.c.bf16 %v848_v32, %v840_v30  ;;  %v2130_v37 = vld [vmem:[#allocation10 + $0x60] sm:$0xff]  ;;  %2907 = vst [vmem:[#allocation36_spill] sm:$0xff] %v2182_v0  ;;  %2909 = vst [vmem:[#allocation38_spill] sm:$0xff] %v2186_v6  ;;  %v2196_v13 = vld [vmem:[#allocation10 + $0x1a8] sm:$0xff] }
  0x95   :  { %1573 = vmatprep.subr.bf16.mxu0 %v1572_v43  ;;  %2891 = vst [vmem:[#allocation20_spill] sm:$0xff] %v2130_v37  ;;  %v2142_v43 = vld [vmem:[#allocation10 + $0xf8] sm:$0xff]  ;;  %2910 = vst [vmem:[#allocation39_spill] sm:$0xff] %v2196_v13  ;;  %v2198_v14 = vld [vmem:[#allocation10 + $0x1e8] sm:$0xff] }
  0x96   :  { %2897 = vst [vmem:[#allocation26_spill] sm:$0xff] %v2142_v43  ;;  %2911 = vst [vmem:[#allocation40_spill] sm:$0xff] %v2198_v14  ;;  %v102_v21 = vld [vmem:[#allocation2 + $0x10] sm:$0xf]  ;;  %v103_v22 = vld [vmem:[#allocation2 + $0x18] sm:$0xf] }
  0x97   :  { %1635 = vmatpush1.bf16.msra.mxu1 %v1634_v39  ;;  %v2134_v39 = vld [vmem:[#allocation10 + $0x70] sm:$0xff]  ;;  %v465_v29 = vld [vmem:[#allocation2 + $0x30] sm:$0xf] }
  0x98   :  { %1637 = vmatprep.subr.bf16.mxu1 %v1636_v47  ;;  %1575 = vmatpush1.bf16.msra.mxu0 %v1574_v48  ;;  %2893 = vst [vmem:[#allocation22_spill] sm:$0xff] %v2134_v39  ;;  %v2150_v47 = vsub.s32 0, %v263_v35  ;;  %v2152_v48 = vsub.s32 4, %v263_v35 }
  0x99   :  { %1577 = vmatprep.subr.bf16.mxu0 %v1576_v55  ;;  %v2164_v55 = vsub.s32 2, %v263_v35 }
  0x9b   :  { %1639 = vmatpush1.bf16.msra.mxu1 %v1638_v51  ;;  %v2158_v51 = vld [vmem:[#allocation10 + $0x128] sm:$0xff] }
  0x9c   :  { %1641 = vmatprep.subr.bf16.mxu1 %v1640_v57  ;;  %1579 = vmatpush1.bf16.msra.mxu0 %v1578_v61  ;;  %2902 = vst [vmem:[#allocation31_spill] sm:$0xff] %v2158_v51  ;;  %v2168_v57 = vld [vmem:[#allocation10 + $0x138] sm:$0xff]  ;;  %v2176_v61 = vsub.s32 7, %v263_v35 }
  0x9d   :  { %1581 = vmatprep.subr.bf16.mxu0 %v1580_v7  ;;  %2904 = vst [vmem:[#allocation33_spill] sm:$0xff] %v2168_v57 }
  0x9f   :  { %1643 = vmatpush1.bf16.msra.mxu1 %v1642_v63 }
  0xa0   :  { %1645 = vmatprep.subr.bf16.mxu1 %v1644_v11  ;;  %1583 = vmatpush1.bf16.msra.mxu0 %v1582_v12 }
  0xa1   :  { %1585 = vmatprep.subr.bf16.mxu0 %v1584_v19 }
  0xa3   :  { %1647 = vmatpush1.bf16.msra.mxu1 %v1646_v15 }
  0xa4   :  { %1649 = vmatprep.subr.bf16.mxu1 %v1648_v23  ;;  %1587 = vmatpush1.bf16.msra.mxu0 %v1586_v24 }
  0xa5   :  { %1653 = vmatprep.subr.bf16.mxu0 %v1652_v31 }
  0xa7   :  { %1651 = vmatpush1.bf16.msra.mxu1 %v1650_v27 }
  0xa8   :  { %1717 = vmatprep.subr.bf16.mxu1 %v1716_v33 }
  0xe2   :  { %v107_v53 = vpop.permute.xlu0 %106 }
 0x134   :  { %v211_v7 = vpop.f32.mrb[0].mxu0  ;;  %v533_v8 = vpop.f32.mrb[0].mxu1 }
 0x135   :  { %v212_v15 = vadd.f32 %v211_v7, %v107_v53  ;;  %v213_v16 = vpop.f32.mrb[1].mxu0  ;;  %v534_v17 = vadd.f32 %v533_v8, %v107_v53  ;;  %v535_v18 = vpop.f32.mrb[1].mxu1 }
 0x136   :  { %v214_v23 = vadd.f32 %v213_v16, %v107_v53  ;;  %v2204_v24 = vadd.f32 %v535_v18, %v107_v53 }
 0x137   :  { %v240_v27 = vand.u32 2147483647, %v212_v15  ;;  %v2211_v28 = vmul.f32 %v212_v15, %v2102_v4  ;;  %v562_v30 = vand.u32 2147483647, %v534_v17  ;;  %v2219_v34 = vmul.f32 %v534_v17, %v2106_v5 }
 0x138   :  { %v241_v32 = vand.u32 2147483647, %v214_v23  ;;  %v2216_v33 = vmul.f32 %v214_v23, %v2098_v2  ;;  %v2222_v35 = vand.u32 2147483647, %v2204_v24  ;;  %v217_v53 = vpop.f32.mrb[2].mxu0  ;;  %v2224_v7 = vpop.f32.mrb[2].mxu1  ;;  %v2250_v63 = vmul.f32 %v2204_v24, %v2100_v3 }
 0x139   :  { %2912 = vst [vmem:[#allocation41_spill] sm:$0xff] %v2219_v34  ;;  %v254_v8 = vrot.slane %v240_v27, 4  ;;  %v2226_v16 = vmul.f32 %v240_v27, %v102_v21  ;;  %v265_v18 = vrot.slane %v2211_v28, %v2150_v47  ;;  %v576_v31 = vrot.slane %v562_v30, 4  ;;  %v219_v26 = vpop.f32.mrb[3].mxu0  ;;  %v2230_v25 = vpop.f32.mrb[3].mxu1 }
 0x13a   :  { %v255_v20 = vrot.slane %v241_v32, 4  ;;  %v2232_v19 = vmul.f32 %v241_v32, %v103_v22  ;;  %v269_v12 = vrot.slane %v2216_v33, %v2150_v47  ;;  %v2236_v11 = vmul.f32 %v562_v30, %v465_v29  ;;  %v112_v22 = vpop.permute.xlu0 %111 }
 0x13b   :  { %v2239_v10 = vmul.f32 %v254_v8, %v2102_v4  ;;  %v2243_v21 = vrot.slane %v2226_v16, %v2150_v47  ;;  %v2246_v9 = vmul.f32 %v576_v31, %v2106_v5  ;;  %v270_v62 = vmul.f32 %v265_v18, %v212_v15  ;;  %v466_v8 = vld [vmem:[#allocation2 + $0x38] sm:$0xf] }
 0x13c   :  { %2913 = vst [vmem:[#allocation42_spill] sm:$0xff] %v2232_v19  ;;  %2914 = vst [vmem:[#allocation43_spill] sm:$0xff] %v2236_v11  ;;  %v2253_v13 = vmul.f32 %v255_v20, %v2098_v2  ;;  %v2257_v4 = vrot.slane %v2232_v19, %v2150_v47  ;;  %v587_v29 = vrot.slane %v2219_v34, %v2150_v47  ;;  %v2261_v14 = vpop.f32.mrb[4].mxu0  ;;  %v2263_v5 = vpop.f32.mrb[4].mxu1  ;;  %v577_v57 = vrot.slane %v2222_v35, 4 }
 0x13d   :  { %2915 = vst [vmem:[#allocation44_spill] sm:$0xff] %v2246_v9  ;;  %v2267_v31 = vrot.slane %v2239_v10, %v2152_v48  ;;  %v271_v15 = vmul.f32 %v269_v12, %v214_v23  ;;  %v2271_v2 = vrot.slane %v2246_v9, %v2152_v48  ;;  %v2275_v20 = vrot.slane %v2236_v11, %v2150_v47  ;;  %v2277_v1 = vpop.f32.mrb[5].mxu0  ;;  %v2279_v6 = vpop.f32.mrb[5].mxu1 }
 0x13e   :  { %2916 = vst [vmem:[#allocation45_spill] sm:$0xff] %v2253_v13  ;;  %2917 = vst [vmem:[#allocation46_spill] sm:$0xff] %v2257_v4  ;;  %v2282_v59 = vmul.f32 %v2243_v21, %v240_v27  ;;  %v2286_v0 = vrot.slane %v2253_v13, %v2152_v48  ;;  %v2289_v23 = vmul.f32 %v2257_v4, %v241_v32 }
 0x13f   :  { %v2293_v58 = vmul.f32 %v2267_v31, %v240_v27  ;;  %v592_v51 = vmul.f32 %v587_v29, %v534_v17  ;;  %v2296_v52 = vmul.f32 %v2271_v2, %v562_v30  ;;  %v2299_v46 = vmul.f32 %v2222_v35, %v466_v8 }
 0x140   :  { %2918 = vst [vmem:[#allocation47_spill] sm:$0xff] %v2286_v0  ;;  %2919 = vst [vmem:[#allocation48_spill] sm:$0xff] %v2289_v23  ;;  %v2302_v50 = vmul.f32 %v2275_v20, %v562_v30  ;;  %v2305_v44 = vmul.f32 %v577_v57, %v2100_v3  ;;  %v591_v45 = vrot.slane %v2250_v63, %v2150_v47  ;;  %v2309_v43 = vpop.f32.mrb[6].mxu0  ;;  %v2311_v27 = vpop.f32.mrb[6].mxu1 }
 0x141   :  { %2920 = vst [vmem:[#allocation49_spill] sm:$0xff] %v2293_v58  ;;  %2921 = vst [vmem:[#allocation50_spill] sm:$0xff] %v2296_v52  ;;  %v218_v42 = vadd.f32 %v217_v53, %v112_v22  ;;  %v2315_v17 = vrot.slane %v2299_v46, %v2150_v47  ;;  %v301_v8 = vrot.slane %v2211_v28, %v2154_v49  ;;  %v2327_v57 = vpop.f32.mrb[7].mxu0  ;;  %v2329_v53 = vpop.f32.mrb[7].mxu1 }
 0x142   :  { %2922 = vst [vmem:[#allocation51_spill] sm:$0xff] %v2299_v46  ;;  %2923 = vst [vmem:[#allocation52_spill] sm:$0xff] %v2302_v50  ;;  %v2321_v30 = vrot.slane %v2239_v10, %v2162_v54  ;;  %v2325_v3 = vrot.slane %v2226_v16, %v2154_v49  ;;  %v2332_v52 = vmul.f32 %v2286_v0, %v241_v32  ;;  %v117_v50 = vpop.permute.xlu1 %116 }
 0x143   :  { %2924 = vst [vmem:[#allocation53_spill] sm:$0xff] %v2305_v44  ;;  %2925 = vst [vmem:[#allocation54_spill] sm:$0xff] %v2315_v17  ;;  %v593_v47 = vmul.f32 %v591_v45, %v2204_v24  ;;  %v2335_v40 = vand.u32 2147483647, %v218_v42  ;;  %v272_v41 = vmul.f32 %v265_v18, %v218_v42  ;;  %v2339_v38 = vrot.slane %v2305_v44, %v2152_v48 }
 0x144   :  { %2926 = vst [vmem:[#allocation55_spill] sm:$0xff] %v2332_v52  ;;  %v306_v39 = vmul.f32 %v301_v8, %v218_v42  ;;  %v220_v36 = vadd.f32 %v219_v26, %v112_v22  ;;  %v305_v37 = vrot.slane %v2216_v33, %v2154_v49  ;;  %v2345_v58 = vmul.f32 %v2315_v17, %v2222_v35  ;;  %v2359_v42 = vpop.f32.mrb[8].mxu0  ;;  %v2361_v26 = vpop.f32.mrb[8].mxu1 }
 0x145   :  { %v2349_v32 = vmul.f32 %v2321_v30, %v2335_v40  ;;  %v2353_v24 = vmul.f32 %v2325_v3, %v2335_v40  ;;  %v2357_v48 = vrot.slane %v2253_v13, %v2162_v54  ;;  %v2365_v23 = vpop.f32.mrb[9].mxu0  ;;  %v2371_v4 = vrot.slane %v2232_v19, %v2154_v49 }
 0x146   :  { %2927 = vst [vmem:[#allocation56_spill] sm:$0xff] %v2345_v58  ;;  %v310_v18 = vadd.f32 %v306_v39, %v270_v62  ;;  %v2363_v52 = vand.u32 2147483647, %v220_v36  ;;  %v273_v58 = vmul.f32 %v269_v12, %v220_v36  ;;  %v307_v17 = vmul.f32 %v305_v37, %v220_v36  ;;  %2931 = vst [vmem:[#allocation60_spill] sm:$0xff] %v2365_v23 }
 0x147   :  { %2928 = vst [vmem:[#allocation57_spill] sm:$0xff] %v2349_v32  ;;  %2929 = vst [vmem:[#allocation58_spill] sm:$0xff] %v2357_v48  ;;  %v2367_v32 = vpop.f32.mrb[9].mxu1  ;;  %v540_v13 = vadd.f32 %v2224_v7, %v112_v22  ;;  %v623_v0 = vrot.slane %v2219_v34, %v2154_v49  ;;  %v2378_v39 = vrot.slane %v2246_v9, %v2162_v54 }
 0x148   :  { %2930 = vst [vmem:[#allocation59_spill] sm:$0xff] %v2363_v52  ;;  %2932 = vst [vmem:[#allocation61_spill] sm:$0xff] %v2367_v32  ;;  %v311_v62 = vadd.f32 %v307_v17, %v271_v15  ;;  %v2382_v36 = vmul.f32 %v2357_v48, %v2363_v52  ;;  %v2386_v12 = vrot.slane %v2236_v11, %v2154_v49 }
 0x149   :  { %2933 = vst [vmem:[#allocation62_spill] sm:$0xff] %v2371_v4  ;;  %v542_v32 = vadd.f32 %v2230_v25, %v112_v22  ;;  %v2391_v7 = vmul.f32 %v2371_v4, %v2363_v52  ;;  %v2393_v19 = vand.u32 2147483647, %v540_v13  ;;  %v594_v23 = vmul.f32 %v587_v29, %v540_v13 }
 0x14a   :  { %2934 = vst [vmem:[#allocation63_spill] sm:$0xff] %v2382_v36  ;;  %v628_v9 = vmul.f32 %v623_v0, %v540_v13  ;;  %v627_v36 = vrot.slane %v2250_v63, %v2154_v49  ;;  %v2401_v48 = vrot.slane %v2305_v44, %v2162_v54  ;;  %v2413_v13 = vrot.slane %v2299_v46, %v2154_v49 }
 0x14b   :  { %2935 = vst [vmem:[#allocation64_spill] sm:$0xff] %v2391_v7  ;;  %v2395_v15 = vand.u32 2147483647, %v542_v32  ;;  %v595_v17 = vmul.f32 %v591_v45, %v542_v32  ;;  %v2405_v22 = vmul.f32 %v2378_v39, %v2393_v19  ;;  %v2409_v29 = vmul.f32 %v2386_v12, %v2393_v19 }
 0x14c   :  { %2937 = vst [vmem:[#allocation66_spill] sm:$0xff] %v2401_v48  ;;  %v632_v25 = vadd.f32 %v628_v9, %v592_v51  ;;  %2939 = vst [vmem:[#allocation68_spill] sm:$0xff] %v2413_v13  ;;  %v629_v45 = vmul.f32 %v627_v36, %v542_v32  ;;  %v224_v54 = vadd.f32 %v2261_v14, %v117_v50 }
 0x14d   :  { %2936 = vst [vmem:[#allocation65_spill] sm:$0xff] %v2395_v15  ;;  %2938 = vst [vmem:[#allocation67_spill] sm:$0xff] %v2405_v22  ;;  %v2417_v7 = vmul.f32 %v2401_v48, %v2395_v15  ;;  %v349_v51 = vrot.slane %v2211_v28, %v2164_v55  ;;  %v2424_v9 = vmul.f32 %v2413_v13, %v2395_v15  ;;  %v122_v15 = vpop.permute.xlu1 %121 }
 0x14e   :  { %v546_v22 = vadd.f32 %v2263_v5, %v117_v50  ;;  %v671_v49 = vrot.slane %v2219_v34, %v2164_v55  ;;  %v226_v32 = vadd.f32 %v2277_v1, %v117_v50  ;;  %v2432_v46 = vmul.f32 %v2339_v38, %v2222_v35 }
 0x14f   :  { %2940 = vst [vmem:[#allocation69_spill] sm:$0xff] %v2417_v7  ;;  %2941 = vst [vmem:[#allocation70_spill] sm:$0xff] %v2424_v9  ;;  %v633_v7 = vadd.f32 %v629_v45, %v593_v47  ;;  %v308_v14 = vmul.f32 %v301_v8, %v224_v54  ;;  %v354_v44 = vmul.f32 %v349_v51, %v224_v54  ;;  %v2434_v48 = vand.u32 2147483647, %v224_v54 }
 0x150   :  { %v2436_v4 = vand.u32 2147483647, %v546_v22  ;;  %v630_v13 = vmul.f32 %v623_v0, %v546_v22  ;;  %v676_v9 = vmul.f32 %v671_v49, %v546_v22  ;;  %v309_v11 = vmul.f32 %v305_v37, %v226_v32 }
 0x151   :  { %v312_v5 = vadd.f32 %v308_v14, %v272_v41  ;;  %v358_v52 = vadd.f32 %v354_v44, %v310_v18  ;;  %v353_v1 = vrot.slane %v2216_v33, %v2164_v55  ;;  %v548_v8 = vadd.f32 %v2279_v6, %v117_v50 }
 0x152   :  { %v2440_v34 = vadd.f32 %v630_v13, %v594_v23  ;;  %v2442_v35 = vadd.f32 %v676_v9, %v632_v25  ;;  %v675_v47 = vrot.slane %v2250_v63, %v2164_v55  ;;  %v2447_v45 = vadd.f32 %v309_v11, %v273_v58  ;;  %v2462_v11 = vpop.permute.xlu0 %126 }
 0x153   :  { %v355_v0 = vmul.f32 %v353_v1, %v226_v32  ;;  %v230_v22 = vadd.f32 %v2309_v43, %v122_v15  ;;  %v2451_v41 = vadd.f32 %v2311_v27, %v122_v15  ;;  %v2453_v37 = vand.u32 2147483647, %v226_v32 }
 0x154   :  { %v631_v44 = vmul.f32 %v627_v36, %v548_v8  ;;  %v677_v23 = vmul.f32 %v675_v47, %v548_v8  ;;  %v2456_v18 = vadd.f32 %v2327_v57, %v122_v15  ;;  %v2460_v50 = vand.u32 2147483647, %v548_v8 }
 0x155   :  { %v2458_v25 = vadd.f32 %v355_v0, %v311_v62  ;;  %v246_v6 = vand.u32 2147483647, %v230_v22  ;;  %v356_v58 = vmul.f32 %v349_v51, %v230_v22  ;;  %v2469_v27 = vand.u32 2147483647, %v2451_v41 }
 0x156   :  { %v2464_v13 = vadd.f32 %v631_v44, %v595_v17  ;;  %v2466_v43 = vadd.f32 %v677_v23, %v633_v7  ;;  %v678_v36 = vmul.f32 %v671_v49, %v2451_v41  ;;  %v2473_v57 = vmul.f32 %v353_v1, %v2456_v18 }
 0x157   :  { %v2476_v62 = vadd.f32 %v2329_v53, %v122_v15  ;;  %v236_v54 = vadd.f32 %v2359_v42, %v2462_v11  ;;  %v284_v17 = vmul.f32 %v2267_v31, %v2335_v40  ;;  %v296_v7 = vmul.f32 %v2243_v21, %v2335_v40 }
 0x158   :  { %v324_v51 = vmul.f32 %v2321_v30, %v2434_v48  ;;  %v340_v9 = vmul.f32 %v2325_v3, %v2434_v48  ;;  %v342_v49 = vadd.f32 %v2353_v24, %v2282_v59  ;;  %v2491_v53 = vand.u32 2147483647, %v2456_v18 }
 0x159   :  { %v2494_v42 = vmul.f32 %v675_v47, %v2476_v62  ;;  %v248_v15 = vand.u32 2147483647, %v236_v54  ;;  %v360_v31 = vadd.f32 %v356_v58, %v312_v5  ;;  %v2498_v40 = vrot.slane %v2239_v10, %v2166_v56 }
 0x15a   :  { %v328_v32 = vadd.f32 %v324_v51, %v284_v17  ;;  %v344_v14 = vadd.f32 %v340_v9, %v296_v7  ;;  %v381_v21 = vrot.slane %v2226_v16, %v2164_v55  ;;  %v397_v59 = vrot.slane %v2211_v28, %v2174_v60 }
 0x15b   :  { %v413_v30 = vrot.slane %v2239_v10, %v2176_v61  ;;  %v429_v3 = vrot.slane %v2226_v16, %v2174_v60  ;;  %v558_v24 = vadd.f32 %v2361_v26, %v2462_v11  ;;  %v372_v5 = vmul.f32 %v2498_v40, %v246_v6 }
 0x15c   :  { %v386_v1 = vmul.f32 %v381_v21, %v2434_v48  ;;  %v388_v8 = vmul.f32 %v381_v21, %v246_v6  ;;  %v606_v47 = vmul.f32 %v2271_v2, %v2393_v19  ;;  %v402_v0 = vmul.f32 %v397_v59, %v230_v22 }
 0x15d   :  { %v404_v44 = vmul.f32 %v397_v59, %v236_v54  ;;  %v2514_v28 = vmul.f32 %v413_v30, %v246_v6  ;;  %v420_v23 = vmul.f32 %v413_v30, %v248_v15  ;;  %v376_v10 = vadd.f32 %v372_v5, %v328_v32  ;;  %v2944_v30 = vld [vmem:[#allocation43_spill] sm:$0xff]  ;;  %v2945_v5 = vld [vmem:[#allocation41_spill] sm:$0xff] }
 0x15e   :  { %v390_v58 = vadd.f32 %v386_v1, %v342_v49  ;;  %v392_v17 = vadd.f32 %v388_v8, %v344_v14  ;;  %v434_v16 = vmul.f32 %v429_v3, %v246_v6  ;;  %v2517_v7 = vand.u32 2147483647, %v2476_v62 }
 0x15f   :  { %v2519_v26 = vadd.f32 %v402_v0, %v358_v52  ;;  %v2521_v51 = vadd.f32 %v404_v44, %v360_v31  ;;  %v436_v9 = vmul.f32 %v429_v3, %v248_v15  ;;  %v2523_v21 = vadd.f32 %v420_v23, %v376_v10  ;;  %v2942_v31 = vld [vmem:[#allocation52_spill] sm:$0xff]  ;;  %v2947_v44 = vld [vmem:[#allocation59_spill] sm:$0xff] }
 0x160   :  { %v2525_v2 = vadd.f32 %v434_v16, %v390_v58  ;;  %v618_v22 = vmul.f32 %v2275_v20, %v2393_v19  ;;  %v646_v54 = vmul.f32 %v2378_v39, %v2436_v4  ;;  %v570_v32 = vand.u32 2147483647, %v558_v24  ;;  %v2943_v20 = vld [vmem:[#allocation44_spill] sm:$0xff]  ;;  %v2948_v23 = vld [vmem:[#allocation47_spill] sm:$0xff] }
 0x161   :  { %v440_v49 = vadd.f32 %v436_v9, %v392_v17  ;;  %v789_v6 = vrot.slane %v2519_v26, 4  ;;  %v662_v52 = vmul.f32 %v2386_v12, %v2436_v4  ;;  %v664_v14 = vadd.f32 %v2409_v29, %v2942_v31 }
 0x162   :  { %1797 = vrcp.f32 %v2525_v2  ;;  %v650_v15 = vadd.f32 %v646_v54, %v606_v47  ;;  %v682_v59 = vadd.f32 %v678_v36, %v2440_v34  ;;  %v2540_v39 = vrot.slane %v2943_v20, %v2166_v56  ;;  %v2946_v34 = vld [vmem:[#allocation60_spill] sm:$0xff] }
 0x163   :  { %1799 = vrcp.f32 %v440_v49  ;;  %v666_v19 = vadd.f32 %v662_v52, %v618_v22  ;;  %v703_v3 = vrot.slane %v2944_v30, %v2164_v55  ;;  %v719_v12 = vrot.slane %v2945_v5, %v2174_v60  ;;  %v2949_v5 = vld [vmem:[#allocation46_spill] sm:$0xff] }
 0x164   :  { %v735_v1 = vrot.slane %v2943_v20, %v2176_v61  ;;  %v751_v29 = vrot.slane %v2944_v30, %v2174_v60  ;;  %v238_v36 = vadd.f32 %v2946_v34, %v2462_v11  ;;  %v694_v8 = vmul.f32 %v2540_v39, %v2469_v27 }
 0x165   :  { %v708_v47 = vmul.f32 %v703_v3, %v2436_v4  ;;  %v710_v0 = vmul.f32 %v703_v3, %v2469_v27  ;;  %v285_v10 = vmul.f32 %v2948_v23, %v2947_v44  ;;  %v2559_v58 = vmul.f32 %v719_v12, %v2451_v41 }
 0x166   :  { %v726_v17 = vmul.f32 %v719_v12, %v558_v24  ;;  %v2562_v16 = vmul.f32 %v735_v1, %v2469_v27  ;;  %v742_v9 = vmul.f32 %v735_v1, %v570_v32  ;;  %v698_v22 = vadd.f32 %v694_v8, %v650_v15  ;;  %v2950_v12 = vld [vmem:[#allocation58_spill] sm:$0xff]  ;;  %v2952_v1 = vld [vmem:[#allocation48_spill] sm:$0xff] }
 0x167   :  { %v712_v54 = vadd.f32 %v708_v47, %v664_v14  ;;  %v714_v52 = vadd.f32 %v710_v0, %v666_v19  ;;  %v756_v31 = vmul.f32 %v751_v29, %v2469_v27  ;;  %v790_v20 = vrot.slane %v2521_v51, 4  ;;  %v2951_v15 = vld [vmem:[#allocation62_spill] sm:$0xff]  ;;  %v2953_v8 = vld [vmem:[#allocation64_spill] sm:$0xff]  ;;  %v2954_v0 = vld [vmem:[#allocation45_spill] sm:$0xff] }
 0x168   :  { %v2566_v30 = vadd.f32 %v726_v17, %v682_v59  ;;  %v758_v3 = vmul.f32 %v751_v29, %v570_v32  ;;  %v297_v34 = vmul.f32 %v2949_v5, %v2947_v44  ;;  %v2570_v41 = vadd.f32 %v742_v9, %v698_v22  ;;  %v2955_v22 = vld [vmem:[#allocation42_spill] sm:$0xff] }
 0x169   :  { %v760_v24 = vadd.f32 %v756_v31, %v712_v54  ;;  %v325_v23 = vmul.f32 %v2950_v12, %v2453_v37  ;;  %v341_v14 = vmul.f32 %v2951_v15, %v2453_v37  ;;  %v249_v27 = vand.u32 2147483647, %v238_v36 }
 0x16a   :  { %v2576_v19 = vadd.f32 %v758_v3, %v714_v52  ;;  %v343_v59 = vadd.f32 %v2953_v8, %v2952_v1  ;;  %v361_v32 = vadd.f32 %v2473_v57, %v2447_v45  ;;  %v2584_v44 = vrot.slane %v2954_v0, %v2166_v56  ;;  %v2956_v3 = vld [vmem:[#allocation61_spill] sm:$0xff] }
 0x16b   :  { %1801 = vrcp.f32 %v760_v24  ;;  %v329_v29 = vadd.f32 %v325_v23, %v285_v10  ;;  %v345_v47 = vadd.f32 %v341_v14, %v297_v34  ;;  %v385_v54 = vrot.slane %v2955_v22, %v2164_v55 }
 0x16c   :  { %v2586_v17 = vpop.eup %1797  ;;  %1803 = vrcp.f32 %v2576_v19  ;;  %v401_v52 = vrot.slane %v2216_v33, %v2174_v60  ;;  %v373_v57 = vmul.f32 %v2584_v44, %v2491_v53  ;;  %v417_v10 = vrot.slane %v2954_v0, %v2176_v61 }
 0x16d   :  { %v2594_v45 = vpop.eup %1799  ;;  %v433_v31 = vrot.slane %v2955_v22, %v2174_v60  ;;  %v560_v5 = vadd.f32 %v2956_v3, %v2462_v11  ;;  %v387_v12 = vmul.f32 %v385_v54, %v2453_v37  ;;  %v389_v33 = vmul.f32 %v385_v54, %v2491_v53  ;;  %v2961_v3 = vld [vmem:[#allocation56_spill] sm:$0xff] }
 0x16e   :  { %v2605_v34 = vmul.f32 %v2594_v45, %v440_v49  ;;  %v403_v23 = vmul.f32 %v401_v52, %v2456_v18  ;;  %v377_v15 = vadd.f32 %v373_v57, %v329_v29  ;;  %v405_v14 = vmul.f32 %v401_v52, %v238_v36  ;;  %v2957_v29 = vld [vmem:[#allocation65_spill] sm:$0xff]  ;;  %v2958_v57 = vld [vmem:[#allocation54_spill] sm:$0xff] }
 0x16f   :  { %v2611_v1 = vmul.f32 %v417_v10, %v2491_v53  ;;  %v421_v8 = vmul.f32 %v417_v10, %v249_v27  ;;  %v2615_v0 = vmul.f32 %v2586_v17, %v2525_v2  ;;  %v391_v11 = vadd.f32 %v387_v12, %v343_v59  ;;  %v2959_v2 = vld [vmem:[#allocation66_spill] sm:$0xff] }
 0x170   :  { %v393_v22 = vadd.f32 %v389_v33, %v345_v47  ;;  %v435_v49 = vmul.f32 %v433_v31, %v2491_v53  ;;  %v409_v54 = vadd.f32 %v405_v14, %v361_v32  ;;  %v437_v18 = vmul.f32 %v433_v31, %v249_v27  ;;  %v2960_v53 = vld [vmem:[#allocation68_spill] sm:$0xff]  ;;  %v2962_v32 = vld [vmem:[#allocation70_spill] sm:$0xff] }
 0x171   :  { %v2619_v9 = vadd.f32 %v421_v8, %v377_v15  ;;  %v607_v52 = vmul.f32 %v2339_v38, %v2957_v29  ;;  %v619_v10 = vmul.f32 %v2958_v57, %v2957_v29  ;;  %v647_v59 = vmul.f32 %v2959_v2, %v2460_v50  ;;  %v2963_v38 = vld [vmem:[#allocation53_spill] sm:$0xff] }
 0x172   :  { %v439_v36 = vadd.f32 %v435_v49, %v391_v11  ;;  %v441_v47 = vadd.f32 %v437_v18, %v393_v22  ;;  %v571_v12 = vand.u32 2147483647, %v560_v5  ;;  %v663_v33 = vmul.f32 %v2960_v53, %v2460_v50  ;;  %v2964_v22 = vld [vmem:[#allocation51_spill] sm:$0xff] }
 0x173   :  { %v665_v15 = vadd.f32 %v2962_v32, %v2961_v3  ;;  %v651_v27 = vadd.f32 %v647_v59, %v607_v52  ;;  %v683_v31 = vadd.f32 %v2494_v42, %v2464_v13  ;;  %v2635_v14 = vrot.slane %v2963_v38, %v2166_v56 }
 0x174   :  { %1805 = vrcp.f32 %v439_v36  ;;  %v667_v11 = vadd.f32 %v663_v33, %v619_v10  ;;  %v707_v49 = vrot.slane %v2964_v22, %v2164_v55  ;;  %v723_v18 = vrot.slane %v2250_v63, %v2174_v60 }
 0x175   :  { %v2637_v8 = vpop.eup %1801  ;;  %1807 = vrcp.f32 %v441_v47  ;;  %v793_v29 = vrot.slane %v409_v54, 4  ;;  %v695_v13 = vmul.f32 %v2635_v14, %v2517_v7  ;;  %v739_v56 = vrot.slane %v2963_v38, %v2176_v61 }
 0x176   :  { %v2643_v3 = vpop.eup %1803  ;;  %v755_v42 = vrot.slane %v2964_v22, %v2174_v60  ;;  %v2652_v52 = vmul.f32 %v2637_v8, %v760_v24  ;;  %v709_v55 = vmul.f32 %v707_v49, %v2460_v50  ;;  %v711_v57 = vmul.f32 %v707_v49, %v2517_v7 }
 0x177   :  { %v725_v63 = vmul.f32 %v723_v18, %v2476_v62  ;;  %v699_v10 = vadd.f32 %v695_v13, %v651_v27  ;;  %v727_v54 = vmul.f32 %v723_v18, %v560_v5  ;;  %v2658_v2 = vmul.f32 %v739_v56, %v2517_v7 }
 0x178   :  { %v743_v59 = vmul.f32 %v739_v56, %v571_v12  ;;  %v2662_v61 = vmul.f32 %v2643_v3, %v2576_v19  ;;  %v713_v60 = vadd.f32 %v709_v55, %v665_v15  ;;  %v715_v53 = vadd.f32 %v711_v57, %v667_v11  ;;  %v2965_v11 = vld [vmem:[#allocation55_spill] sm:$0xff] }
 0x179   :  { %v757_v24 = vmul.f32 %v755_v42, %v2517_v7  ;;  %v731_v33 = vadd.f32 %v727_v54, %v683_v31  ;;  %v759_v38 = vmul.f32 %v755_v42, %v571_v12  ;;  %v407_v62 = vadd.f32 %v403_v23, %v2458_v25  ;;  %v2966_v25 = vld [vmem:[#allocation63_spill] sm:$0xff] }
 0x17a   :  { %v2665_v32 = vadd.f32 %v743_v59, %v699_v10  ;;  %v2675_v5 = vsel %vm788_vm1, %v789_v6, %v790_v20  ;;  %v729_v19 = vadd.f32 %v725_v63, %v2466_v43  ;;  %v728_v7 = vadd.f32 %v2559_v58, %v2442_v35  ;;  %v2967_v35 = vld [vmem:[#allocation49_spill] sm:$0xff]  ;;  %v2971_v57 = vld [vmem:[#allocation19_spill] sm:$0xff]  ;;  %v2973_v10 = vld [vmem:[#allocation22_spill] sm:$0xff] }
 0x17b   :  { %v2668_v27 = vadd.f32 %v757_v24, %v713_v60  ;;  %v2680_v15 = vadd.f32 %v759_v38, %v715_v53  ;;  %v805_v31 = vrot.slane %v731_v33, 4  ;;  %v792_v12 = vrot.slane %v407_v62, 4  ;;  %v2968_v58 = vld [vmem:[#allocation57_spill] sm:$0xff]  ;;  %v888_v33 = vld [vmem:[#allocation10 + $0x1b8] sm:$0xff] }
 0x17c   :  { %v327_v23 = vadd.f32 %v2966_v25, %v2965_v11  ;;  %v804_v51 = vrot.slane %v729_v19, 4  ;;  %v801_v22 = vrot.slane %v728_v7, 4  ;;  %v371_v26 = vmul.f32 %v2584_v44, %v2453_v37  ;;  %v2977_v60 = vld [vmem:[#allocation69_spill] sm:$0xff]  ;;  %v896_v38 = vld [vmem:[#allocation10 + $0x1f8] sm:$0xff]  ;;  %v2979_v7 = vld [vmem:[#allocation23_spill] sm:$0xff] }
 0x17d   :  { %1809 = vrcp.f32 %v2668_v27  ;;  %v2689_v43 = vsel %vm788_vm1, %v792_v12, %v793_v29  ;;  %v326_v20 = vadd.f32 %v2968_v58, %v2967_v35  ;;  %v370_v49 = vmul.f32 %v2498_v40, %v2434_v48  ;;  %v2986_v58 = vld [vmem:[#allocation28_spill] sm:$0xff] }
 0x17e   :  { %v1806_v6 = vpop.eup %1805  ;;  %1811 = vrcp.f32 %v2680_v15  ;;  %1153 = vmatprep.mubr.f32.mxu0 %v2689_v43  ;;  %1242 = vmatprep.mubr.f32.mxu1 %v2689_v43  ;;  %v2698_v37 = vsel %vm788_vm1, %v804_v51, %v805_v31  ;;  %v2969_v44 = vrot.slane %v2566_v30, 4  ;;  %v450_v56 = vsub.f32 2.0, %v2615_v0  ;;  %v2974_v30 = vld [vmem:[#allocation21_spill] sm:$0xff]  ;;  %v2981_v31 = vld [vmem:[#allocation26_spill] sm:$0xff]  ;;  %v2985_v51 = vld [vmem:[#allocation67_spill] sm:$0xff] }
 0x17f   :  { %v1808_v18 = vpop.eup %1807  ;;  %v447_v13 = vmul.f32 %v1806_v6, %v439_v36  ;;  %v774_v42 = vsub.f32 2.0, %v2662_v61  ;;  %1154 = vmatmul.mubr.f32.vlgmr.msra.gmra.mrb[10].mxu0 %v2675_v5  ;;  %1243 = vmatmul.mubr.f32.vlgmr.msra.gmra.mrb[10].mxu1 %v2675_v5  ;;  %v375_v48 = vadd.f32 %v371_v26, %v327_v23  ;;  %v374_v40 = vadd.f32 %v370_v49, %v326_v20  ;;  %v2970_v36 = vld [vmem:[#allocation20_spill] sm:$0xff]  ;;  %v2984_v23 = vld [vmem:[#allocation50_spill] sm:$0xff]  ;;  %v2987_v20 = vld [vmem:[#allocation27_spill] sm:$0xff] }
 0x180   :  { %v2703_v29 = vsel %vm788_vm1, %v801_v22, %v2969_v44  ;;  %v449_v55 = vmul.f32 %v1808_v18, %v441_v47  ;;  %v2972_v63 = vpack.c.bf16 %v2970_v36, %v2971_v57  ;;  %v2975_v54 = vpack.c.bf16 %v2973_v10, %v2974_v30  ;;  %1159 = vmatprep.mubr.f32.mxu0 %v2698_v37  ;;  %v2996_v57 = vld [vmem:[#allocation33_spill] sm:$0xff] }
 0x181   :  { %v451_v59 = vsub.f32 2.0, %v447_v13  ;;  %v454_v0 = vmul.f32 %v2586_v17, %v450_v56  ;;  %v2976_v61 = vsub.f32 2.0, %v2605_v34  ;;  %v649_v53 = vadd.f32 %v2977_v60, %v2432_v46  ;;  %1248 = vmatprep.mubr.f32.mxu1 %v2698_v37  ;;  %v2978_v34 = vld [vmem:[#allocation24_spill] sm:$0xff]  ;;  %v2982_v46 = vld [vmem:[#allocation25_spill] sm:$0xff] }
 0x182   :  { %1655 = vmatpush1.bf16.msra.mxu0 %v2972_v63  ;;  %1719 = vmatpush1.bf16.msra.mxu1 %v2975_v54  ;;  %v453_v24 = vsub.f32 2.0, %v449_v55  ;;  %v423_v62 = vadd.f32 %v2611_v1, %v375_v48  ;;  %v422_v19 = vadd.f32 %v2514_v28, %v374_v40  ;;  %v693_v17 = vmul.f32 %v2635_v14, %v2460_v50  ;;  %v885_v50 = vld [vmem:[#allocation10 + $0x1a0] sm:$0xff]  ;;  %v2992_v48 = vld [vmem:[#allocation32_spill] sm:$0xff]  ;;  %v887_v10 = vld [vmem:[#allocation10 + $0x1b0] sm:$0xff] }
 0x183   :  { %v456_v47 = vmul.f32 %v2594_v45, %v2976_v61  ;;  %v2980_v45 = vpack.c.bf16 %v2978_v34, %v2979_v7  ;;  %v2983_v12 = vpack.c.bf16 %v2981_v31, %v2982_v46  ;;  %v455_v11 = vmul.f32 %v1806_v6, %v451_v59  ;;  %1160 = vmatmul.mubr.f32.gmra.mrb[12].mxu0 %v2703_v29  ;;  %v893_v28 = vld [vmem:[#allocation10 + $0x1e0] sm:$0xff]  ;;  %v2989_v6 = vld [vmem:[#allocation30_spill] sm:$0xff]  ;;  %v895_v30 = vld [vmem:[#allocation10 + $0x1f0] sm:$0xff] }
 0x184   :  { %v648_v22 = vadd.f32 %v2985_v51, %v2984_v23  ;;  %v772_v1 = vsub.f32 2.0, %v2652_v52  ;;  %1249 = vmatmul.mubr.f32.gmra.mrb[12].mxu1 %v2703_v29  ;;  %v457_v14 = vmul.f32 %v1808_v18, %v453_v24  ;;  %v458_v26 = vmul.f32 %v454_v0, %v422_v19  ;;  %v2993_v40 = vld [vmem:[#allocation31_spill] sm:$0xff]  ;;  %v2995_v18 = vld [vmem:[#allocation34_spill] sm:$0xff]  ;;  %v902_v54 = vld [vmem:[#allocation10 + $0x228] sm:$0xff] }
 0x185   :  { %1657 = vmatprep.subr.bf16.mxu0 %v2980_v45  ;;  %1721 = vmatprep.subr.bf16.mxu1 %v2983_v12  ;;  %v460_v25 = vmul.f32 %v456_v47, %v2523_v21  ;;  %v697_v35 = vadd.f32 %v693_v17, %v649_v53  ;;  %v2988_v49 = vpack.c.bf16 %v2986_v58, %v2987_v20  ;;  %v2990_v21 = vld [vmem:[#allocation29_spill] sm:$0xff]  ;;  %v904_v53 = vld [vmem:[#allocation10 + $0x238] sm:$0xff]  ;;  %v2999_v7 = vld [vmem:[#allocation35_spill] sm:$0xff] }
 0x186   :  { %v2991_v13 = vpack.c.bf16 %v2989_v6, %v2990_v21  ;;  %v1728_v44 = vpack.c.bf16 %v896_v38, %v888_v33  ;;  %v459_v56 = vmul.f32 %v455_v11, %v423_v62  ;;  %v692_v55 = vmul.f32 %v2540_v39, %v2436_v4  ;;  %v910_v39 = vld [vmem:[#allocation10 + $0x268] sm:$0xff]  ;;  %v912_v24 = vld [vmem:[#allocation10 + $0x278] sm:$0xff]  ;;  %v3002_v46 = vld [vmem:[#allocation37_spill] sm:$0xff] }
 0x187   :  { %1659 = vmatpush1.bf16.msra.mxu0 %v2988_v49  ;;  %v814_v52 = vrot.slane %v460_v25, 4  ;;  %v2994_v36 = vpack.c.bf16 %v2992_v48, %v2993_v40  ;;  %v2997_v63 = vpack.c.bf16 %v2995_v18, %v2996_v57  ;;  %v461_v59 = vmul.f32 %v457_v14, %v2619_v9  ;;  %v1810_v60 = vpop.eup %1809  ;;  %v3001_v31 = vld [vmem:[#allocation38_spill] sm:$0xff]  ;;  %v901_v11 = vld [vmem:[#allocation10 + $0x220] sm:$0xff]  ;;  %v3004_v23 = vld [vmem:[#allocation40_spill] sm:$0xff] }
 0x188   :  { %1723 = vmatpush1.bf16.msra.mxu1 %v2991_v13  ;;  %v813_v0 = vrot.slane %v458_v26, 4  ;;  %v745_v61 = vadd.f32 %v2658_v2, %v697_v35  ;;  %v778_v47 = vmul.f32 %v2643_v3, %v774_v42  ;;  %v1666_v4 = vpack.c.bf16 %v893_v28, %v885_v50  ;;  %v1812_v19 = vpop.eup %1811  ;;  %v2998_v42 = vld [vmem:[#allocation36_spill] sm:$0xff]  ;;  %v909_v25 = vld [vmem:[#allocation10 + $0x260] sm:$0xff]  ;;  %v911_v50 = vld [vmem:[#allocation10 + $0x270] sm:$0xff] }
 0x189   :  { %1661 = vmatprep.subr.bf16.mxu0 %v2994_v36  ;;  %1725 = vmatprep.subr.bf16.mxu1 %v2997_v63  ;;  %v816_v33 = vrot.slane %v459_v56, 4  ;;  %v696_v38 = vadd.f32 %v692_v55, %v648_v22  ;;  %v776_v62 = vmul.f32 %v2637_v8, %v772_v1  ;;  %v769_v17 = vmul.f32 %v1810_v60, %v2668_v27  ;;  %v3005_v51 = vld [vmem:[#allocation39_spill] sm:$0xff]  ;;  %v903_v1 = vld [vmem:[#allocation10 + $0x230] sm:$0xff]  ;;  %v918_v28 = vld [vmem:[#allocation10 + $0x2a8] sm:$0xff] }
 0x18a   :  { %v817_v34 = vrot.slane %v461_v59, 4  ;;  %v2759_v9 = vsel %vm788_vm1, %v813_v0, %v814_v52  ;;  %v782_v2 = vmul.f32 %v778_v47, %v2570_v41  ;;  %v771_v3 = vmul.f32 %v1812_v19, %v2680_v15  ;;  %v926_v58 = vld [vmem:[#allocation10 + $0x2e8] sm:$0xff]  ;;  %v920_v20 = vld [vmem:[#allocation10 + $0x2b8] sm:$0xff]  ;;  %v917_v56 = vld [vmem:[#allocation10 + $0x2a0] sm:$0xff] }
 0x18b   :  { %v3000_v45 = vpack.c.bf16 %v2998_v42, %v2999_v7  ;;  %v3003_v12 = vpack.c.bf16 %v3001_v31, %v3002_v46  ;;  %v1730_v8 = vpack.c.bf16 %v895_v30, %v887_v10  ;;  %v744_v27 = vadd.f32 %v2562_v16, %v696_v38  ;;  %v928_v49 = vld [vmem:[#allocation10 + $0x2f8] sm:$0xff]  ;;  %v925_v52 = vld [vmem:[#allocation10 + $0x2e0] sm:$0xff]  ;;  %v919_v18 = vld [vmem:[#allocation10 + $0x2b0] sm:$0xff] }
 0x18c   :  { %v3006_v22 = vpack.c.bf16 %v3004_v23, %v3005_v51  ;;  %v1668_v41 = vpack.c.bf16 %v910_v39, %v902_v54  ;;  %v1732_v15 = vpack.c.bf16 %v912_v24, %v904_v53  ;;  %v2774_v14 = vsel %vm788_vm1, %v816_v33, %v817_v34  ;;  %v927_v57 = vld [vmem:[#allocation10 + $0x2f0] sm:$0xff]  ;;  %v934_v10 = vld [vmem:[#allocation10 + $0x328] sm:$0xff]  ;;  %v936_v59 = vld [vmem:[#allocation10 + $0x338] sm:$0xff] }
 0x18d   :  { %1663 = vmatpush1.bf16.msra.mxu0 %v3000_v45  ;;  %1727 = vmatpush1.bf16.msra.mxu1 %v3003_v12  ;;  %v773_v26 = vsub.f32 2.0, %v769_v17  ;;  %v775_v35 = vsub.f32 2.0, %v771_v3  ;;  %v780_v16 = vmul.f32 %v776_v62, %v744_v27  ;;  %v826_v6 = vrot.slane %v782_v2, 4  ;;  %v942_v54 = vld [vmem:[#allocation10 + $0x368] sm:$0xff]  ;;  %v944_v0 = vld [vmem:[#allocation10 + $0x378] sm:$0xff]  ;;  %v933_v24 = vld [vmem:[#allocation10 + $0x320] sm:$0xff] }
 0x18e   :  { %1665 = vmatprep.subr.bf16.mxu0 %v3006_v22  ;;  %1729 = vmatprep.subr.bf16.mxu1 %v1728_v44  ;;  %v1670_v13 = vpack.c.bf16 %v909_v25, %v901_v11  ;;  %v1734_v44 = vpack.c.bf16 %v911_v50, %v903_v1  ;;  %v1672_v40 = vpack.c.bf16 %v926_v58, %v918_v28  ;;  %v941_v33 = vld [vmem:[#allocation10 + $0x360] sm:$0xff]  ;;  %v935_v62 = vld [vmem:[#allocation10 + $0x330] sm:$0xff]  ;;  %v958_v34 = vld [vmem:[#allocation10 + $0x3e8] sm:$0xff] }
 0x18f   :  { %1165 = vmatprep.mubr.f32.mxu0 %v2774_v14  ;;  %1254 = vmatprep.mubr.f32.mxu1 %v2774_v14  ;;  %v777_v21 = vmul.f32 %v1810_v60, %v773_v26  ;;  %v779_v55 = vmul.f32 %v1812_v19, %v775_v35  ;;  %v825_v48 = vrot.slane %v780_v16, 4  ;;  %v1736_v36 = vpack.c.bf16 %v928_v49, %v920_v20  ;;  %v950_v19 = vld [vmem:[#allocation10 + $0x3a8] sm:$0xff]  ;;  %v952_v2 = vld [vmem:[#allocation10 + $0x3b8] sm:$0xff]  ;;  %v949_v45 = vld [vmem:[#allocation10 + $0x3a0] sm:$0xff] }
 0x190   :  { %1166 = vmatmul.mubr.f32.gmra.mrb[14].mxu0 %v2759_v9  ;;  %1255 = vmatmul.mubr.f32.gmra.mrb[14].mxu1 %v2759_v9  ;;  %v1674_v60 = vpack.c.bf16 %v925_v52, %v917_v56  ;;  %v1740_v38 = vpack.c.bf16 %v944_v0, %v936_v59  ;;  %v960_v3 = vld [vmem:[#allocation10 + $0x3f8] sm:$0xff]  ;;  %v1678_v42 = vpack.c.bf16 %v941_v33, %v933_v24  ;;  %v957_v31 = vld [vmem:[#allocation10 + $0x3e0] sm:$0xff]  ;;  %v959_v11 = vld [vmem:[#allocation10 + $0x3f0] sm:$0xff] }
 0x191   :  { %1667 = vmatpush1.bf16.msra.mxu0 %v1666_v4  ;;  %1731 = vmatpush1.bf16.msra.mxu1 %v1730_v8  ;;  %v781_v63 = vmul.f32 %v777_v21, %v745_v61  ;;  %v783_v30 = vmul.f32 %v779_v55, %v2665_v32  ;;  %v2782_v47 = vsel %vm788_vm1, %v825_v48, %v826_v6  ;;  %v943_v32 = vld [vmem:[#allocation10 + $0x370] sm:$0xff]  ;;  %v966_v25 = vld [vmem:[#allocation10 + $0x428] sm:$0xff]  ;;  %v968_v23 = vld [vmem:[#allocation10 + $0x438] sm:$0xff] }
 0x192   :  { %1669 = vmatprep.subr.bf16.mxu0 %v1668_v41  ;;  %1733 = vmatprep.subr.bf16.mxu1 %v1732_v15  ;;  %v1738_v4 = vpack.c.bf16 %v927_v57, %v919_v18  ;;  %v1676_v61 = vpack.c.bf16 %v942_v54, %v934_v10  ;;  %v1742_v7 = vpack.c.bf16 %v943_v32, %v935_v62  ;;  %v951_v8 = vld [vmem:[#allocation10 + $0x3b0] sm:$0xff]  ;;  %v974_v27 = vld [vmem:[#allocation10 + $0x468] sm:$0xff]  ;;  %v976_v51 = vld [vmem:[#allocation10 + $0x478] sm:$0xff] }
 0x193   :  { %v828_v39 = vrot.slane %v781_v63, 4  ;;  %v829_v53 = vrot.slane %v783_v30, 4  ;;  %v1680_v46 = vpack.c.bf16 %v958_v34, %v950_v19  ;;  %v1744_v12 = vpack.c.bf16 %v960_v3, %v952_v2  ;;  %v965_v15 = vld [vmem:[#allocation10 + $0x420] sm:$0xff]  ;;  %v967_v26 = vld [vmem:[#allocation10 + $0x430] sm:$0xff]  ;;  %v982_v58 = vld [vmem:[#allocation10 + $0x4a8] sm:$0xff] }
 0x194   :  { %v1682_v22 = vpack.c.bf16 %v957_v31, %v949_v45  ;;  %v1746_v41 = vpack.c.bf16 %v959_v11, %v951_v8  ;;  %v973_v1 = vld [vmem:[#allocation10 + $0x460] sm:$0xff]  ;;  %v1684_v50 = vpack.c.bf16 %v974_v27, %v966_v25  ;;  %v1748_v28 = vpack.c.bf16 %v976_v51, %v968_v23  ;;  %v975_v35 = vld [vmem:[#allocation10 + $0x470] sm:$0xff]  ;;  %v990_v20 = vld [vmem:[#allocation10 + $0x4e8] sm:$0xff] }
 0x195   :  { %1671 = vmatpush1.bf16.msra.mxu0 %v1670_v13  ;;  %1735 = vmatpush1.bf16.msra.mxu1 %v1734_v44  ;;  %v2785_v17 = vsel %vm788_vm1, %v828_v39, %v829_v53  ;;  %v984_v49 = vld [vmem:[#allocation10 + $0x4b8] sm:$0xff]  ;;  %v1686_v6 = vpack.c.bf16 %v973_v1, %v965_v15  ;;  %v981_v21 = vld [vmem:[#allocation10 + $0x4a0] sm:$0xff]  ;;  %v1688_v44 = vpack.c.bf16 %v990_v20, %v982_v58  ;;  %v983_v52 = vld [vmem:[#allocation10 + $0x4b0] sm:$0xff] }
 0x196   :  { %1673 = vmatprep.subr.bf16.mxu0 %v1672_v40  ;;  %1737 = vmatprep.subr.bf16.mxu1 %v1736_v36  ;;  %v992_v16 = vld [vmem:[#allocation10 + $0x4f8] sm:$0xff]  ;;  %v989_v13 = vld [vmem:[#allocation10 + $0x4e0] sm:$0xff]  ;;  %v991_v55 = vld [vmem:[#allocation10 + $0x4f0] sm:$0xff] }
 0x197   :  { %1171 = vmatprep.mubr.f32.mxu0 %v2785_v17  ;;  %1260 = vmatprep.mubr.f32.mxu1 %v2785_v17  ;;  %v1752_v56 = vpack.c.bf16 %v992_v16, %v984_v49  ;;  %v998_v48 = vld [vmem:[#allocation10 + $0x528] sm:$0xff]  ;;  %v1000_v36 = vld [vmem:[#allocation10 + $0x538] sm:$0xff]  ;;  %v1690_v57 = vpack.c.bf16 %v989_v13, %v981_v21  ;;  %v1754_v63 = vpack.c.bf16 %v991_v55, %v983_v52  ;;  %v997_v10 = vld [vmem:[#allocation10 + $0x520] sm:$0xff] }
 0x198   :  { %1172 = vmatmul.mubr.f32.gmra.mrb[16].mxu0 %v2782_v47  ;;  %1261 = vmatmul.mubr.f32.gmra.mrb[16].mxu1 %v2782_v47  ;;  %v1006_v40 = vld [vmem:[#allocation10 + $0x568] sm:$0xff]  ;;  %v1008_v18 = vld [vmem:[#allocation10 + $0x578] sm:$0xff]  ;;  %v1005_v30 = vld [vmem:[#allocation10 + $0x560] sm:$0xff] }
 0x199   :  { %1675 = vmatpush1.bf16.msra.mxu0 %v1674_v60  ;;  %1739 = vmatpush1.bf16.msra.mxu1 %v1738_v4  ;;  %v1692_v54 = vpack.c.bf16 %v1006_v40, %v998_v48  ;;  %v1756_v59 = vpack.c.bf16 %v1008_v18, %v1000_v36  ;;  %v999_v0 = vld [vmem:[#allocation10 + $0x530] sm:$0xff]  ;;  %v1014_v4 = vld [vmem:[#allocation10 + $0x5a8] sm:$0xff]  ;;  %v1016_v53 = vld [vmem:[#allocation10 + $0x5b8] sm:$0xff]  ;;  %v1694_v33 = vpack.c.bf16 %v1005_v30, %v997_v10 }
 0x19a   :  { %1677 = vmatprep.subr.bf16.mxu0 %v1676_v61  ;;  %1741 = vmatprep.subr.bf16.mxu1 %v1740_v38  ;;  %v1007_v60 = vld [vmem:[#allocation10 + $0x570] sm:$0xff]  ;;  %v1022_v39 = vld [vmem:[#allocation10 + $0x5e8] sm:$0xff]  ;;  %v1024_v24 = vld [vmem:[#allocation10 + $0x5f8] sm:$0xff] }
 0x19b   :  { %1331 = vmatprep.mubr.f32.mxu0 %v2689_v43  ;;  %1420 = vmatprep.mubr.f32.mxu1 %v2689_v43  ;;  %v1750_v43 = vpack.c.bf16 %v975_v35, %v967_v26  ;;  %v1758_v61 = vpack.c.bf16 %v1007_v60, %v999_v0  ;;  %v1013_v38 = vld [vmem:[#allocation10 + $0x5a0] sm:$0xff]  ;;  %v1696_v32 = vpack.c.bf16 %v1022_v39, %v1014_v4  ;;  %v1015_v34 = vld [vmem:[#allocation10 + $0x5b0] sm:$0xff]  ;;  %v1030_v3 = vld [vmem:[#allocation10 + $0x628] sm:$0xff] }
 0x19c   :  { %v1021_v62 = vld [vmem:[#allocation10 + $0x5e0] sm:$0xff]  ;;  %v1760_v19 = vpack.c.bf16 %v1024_v24, %v1016_v53  ;;  %v1023_v2 = vld [vmem:[#allocation10 + $0x5f0] sm:$0xff]  ;;  %v1040_v45 = vld [vmem:[#allocation10 + $0x678] sm:$0xff] }
 0x19d   :  { %1679 = vmatpush1.bf16.msra.mxu0 %v1678_v42  ;;  %1743 = vmatpush1.bf16.msra.mxu1 %v1742_v7  ;;  %v1038_v42 = vld [vmem:[#allocation10 + $0x668] sm:$0xff]  ;;  %v1032_v7 = vld [vmem:[#allocation10 + $0x638] sm:$0xff]  ;;  %v1698_v31 = vpack.c.bf16 %v1021_v62, %v1013_v38  ;;  %v1037_v8 = vld [vmem:[#allocation10 + $0x660] sm:$0xff] }
 0x19e   :  { %1681 = vmatprep.subr.bf16.mxu0 %v1680_v46  ;;  %1745 = vmatprep.subr.bf16.mxu1 %v1744_v12  ;;  %v1762_v46 = vpack.c.bf16 %v1023_v2, %v1015_v34  ;;  %v1029_v12 = vld [vmem:[#allocation10 + $0x620] sm:$0xff]  ;;  %v1700_v11 = vpack.c.bf16 %v1038_v42, %v1030_v3  ;;  %v1764_v25 = vpack.c.bf16 %v1040_v45, %v1032_v7  ;;  %v1031_v27 = vld [vmem:[#allocation10 + $0x630] sm:$0xff]  ;;  %v1046_v51 = vld [vmem:[#allocation10 + $0x6a8] sm:$0xff] }
 0x19f   :  { %v1039_v23 = vld [vmem:[#allocation10 + $0x670] sm:$0xff]  ;;  %v1056_v15 = vld [vmem:[#allocation10 + $0x6f8] sm:$0xff]  ;;  %v1702_v1 = vpack.c.bf16 %v1037_v8, %v1029_v12  ;;  %v1053_v26 = vld [vmem:[#allocation10 + $0x6e0] sm:$0xff] }
 0x1a0   :  { %v1047_v20 = vld [vmem:[#allocation10 + $0x6b0] sm:$0xff]  ;;  %v1062_v16 = vld [vmem:[#allocation10 + $0x728] sm:$0xff]  ;;  %v1072_v21 = vld [vmem:[#allocation10 + $0x778] sm:$0xff] }
 0x1a1   :  { %1683 = vmatpush1.bf16.msra.mxu0 %v1682_v22  ;;  %1747 = vmatpush1.bf16.msra.mxu1 %v1746_v41  ;;  %v1054_v22 = vld [vmem:[#allocation10 + $0x6e8] sm:$0xff]  ;;  %v1048_v41 = vld [vmem:[#allocation10 + $0x6b8] sm:$0xff]  ;;  %v1055_v49 = vld [vmem:[#allocation10 + $0x6f0] sm:$0xff] }
 0x1a2   :  { %1685 = vmatprep.subr.bf16.mxu0 %v1684_v50  ;;  %1749 = vmatprep.subr.bf16.mxu1 %v1748_v28  ;;  %v1766_v50 = vpack.c.bf16 %v1039_v23, %v1031_v27  ;;  %v1045_v28 = vld [vmem:[#allocation10 + $0x6a0] sm:$0xff]  ;;  %v1704_v35 = vpack.c.bf16 %v1054_v22, %v1046_v51  ;;  %v1768_v58 = vpack.c.bf16 %v1056_v15, %v1048_v41  ;;  %v1063_v40 = vld [vmem:[#allocation10 + $0x730] sm:$0xff]  ;;  %v1078_v18 = vld [vmem:[#allocation10 + $0x7a8] sm:$0xff] }
 0x1a3   :  { %v1706_v13 = vpack.c.bf16 %v1053_v26, %v1045_v28  ;;  %v1069_v52 = vld [vmem:[#allocation10 + $0x760] sm:$0xff]  ;;  %v1071_v36 = vld [vmem:[#allocation10 + $0x770] sm:$0xff]  ;;  %v1088_v10 = vld [vmem:[#allocation10 + $0x7f8] sm:$0xff] }
 0x1a4   :  { %v1085_v4 = vld [vmem:[#allocation10 + $0x7e0] sm:$0xff]  ;;  %v1079_v39 = vld [vmem:[#allocation10 + $0x7b0] sm:$0xff] }
 0x1a5   :  { %1687 = vmatpush1.bf16.msra.mxu0 %v1686_v6  ;;  %1751 = vmatpush1.bf16.msra.mxu1 %v1750_v43  ;;  %v1070_v6 = vld [vmem:[#allocation10 + $0x768] sm:$0xff]  ;;  %v1064_v43 = vld [vmem:[#allocation10 + $0x738] sm:$0xff]  ;;  %v1087_v53 = vld [vmem:[#allocation10 + $0x7f0] sm:$0xff] }
 0x1a6   :  { %1689 = vmatprep.subr.bf16.mxu0 %v1688_v44  ;;  %1753 = vmatprep.subr.bf16.mxu1 %v1752_v56  ;;  %v1770_v44 = vpack.c.bf16 %v1055_v49, %v1047_v20  ;;  %v1061_v56 = vld [vmem:[#allocation10 + $0x720] sm:$0xff]  ;;  %v1708_v55 = vpack.c.bf16 %v1070_v6, %v1062_v16  ;;  %v1772_v48 = vpack.c.bf16 %v1072_v21, %v1064_v43 }
 0x1a7   :  { %v1710_v30 = vpack.c.bf16 %v1069_v52, %v1061_v56 }
 0x1a9   :  { %1691 = vmatpush1.bf16.msra.mxu0 %v1690_v57  ;;  %1755 = vmatpush1.bf16.msra.mxu1 %v1754_v63  ;;  %v1086_v57 = vld [vmem:[#allocation10 + $0x7e8] sm:$0xff]  ;;  %v1080_v63 = vld [vmem:[#allocation10 + $0x7b8] sm:$0xff] }
 0x1aa   :  { %1693 = vmatprep.subr.bf16.mxu0 %v1692_v54  ;;  %1757 = vmatprep.subr.bf16.mxu1 %v1756_v59  ;;  %v1774_v54 = vpack.c.bf16 %v1071_v36, %v1063_v40  ;;  %v1077_v59 = vld [vmem:[#allocation10 + $0x7a0] sm:$0xff]  ;;  %v1712_v0 = vpack.c.bf16 %v1086_v57, %v1078_v18  ;;  %v1776_v60 = vpack.c.bf16 %v1088_v10, %v1080_v63 }
 0x1ab   :  { %v1714_v24 = vpack.c.bf16 %v1085_v4, %v1077_v59 }
 0x1ad   :  { %1695 = vmatpush1.bf16.msra.mxu0 %v1694_v33  ;;  %1759 = vmatpush1.bf16.msra.mxu1 %v1758_v61  ;;  %v1778_v33 = vpack.c.bf16 %v1087_v53, %v1079_v39 }
 0x1ae   :  { %1697 = vmatprep.subr.bf16.mxu0 %v1696_v32  ;;  %1761 = vmatprep.subr.bf16.mxu1 %v1760_v19 }
 0x1b1   :  { %1699 = vmatpush1.bf16.msra.mxu0 %v1698_v31  ;;  %1763 = vmatpush1.bf16.msra.mxu1 %v1762_v46 }
 0x1b2   :  { %1701 = vmatprep.subr.bf16.mxu0 %v1700_v11  ;;  %1765 = vmatprep.subr.bf16.mxu1 %v1764_v25 }
 0x1b5   :  { %1703 = vmatpush1.bf16.msra.mxu0 %v1702_v1  ;;  %1767 = vmatpush1.bf16.msra.mxu1 %v1766_v50 }
 0x1b6   :  { %1705 = vmatprep.subr.bf16.mxu0 %v1704_v35  ;;  %1769 = vmatprep.subr.bf16.mxu1 %v1768_v58 }
 0x1b9   :  { %1707 = vmatpush1.bf16.msra.mxu0 %v1706_v13  ;;  %1771 = vmatpush1.bf16.msra.mxu1 %v1770_v44 }
 0x1ba   :  { %1709 = vmatprep.subr.bf16.mxu0 %v1708_v55  ;;  %1773 = vmatprep.subr.bf16.mxu1 %v1772_v48 }
 0x1bd   :  { %1711 = vmatpush1.bf16.msra.mxu0 %v1710_v30  ;;  %1775 = vmatpush1.bf16.msra.mxu1 %v1774_v54 }
 0x1be   :  { %1713 = vmatprep.subr.bf16.mxu0 %v1712_v0  ;;  %1777 = vmatprep.subr.bf16.mxu1 %v1776_v60 }
 0x1c1   :  { %1715 = vmatpush1.bf16.msra.mxu0 %v1714_v24  ;;  %1779 = vmatpush1.bf16.msra.mxu1 %v1778_v33 }
 0x1c4   :  { %1332 = vmatmul.mubr.f32.vlgmr.msra.gmra.mrb[18].mxu0 %v2675_v5  ;;  %1421 = vmatmul.mubr.f32.vlgmr.msra.gmra.mrb[18].mxu1 %v2675_v5 }
 0x1c5   :  { %1337 = vmatprep.mubr.f32.mxu0 %v2698_v37  ;;  %1426 = vmatprep.mubr.f32.mxu1 %v2698_v37 }
 0x1c8   :  { %1338 = vmatmul.mubr.f32.gmra.mrb[20].mxu0 %v2703_v29  ;;  %1427 = vmatmul.mubr.f32.gmra.mrb[20].mxu1 %v2703_v29 }
 0x1c9   :  { %1343 = vmatprep.mubr.f32.mxu0 %v2774_v14  ;;  %1432 = vmatprep.mubr.f32.mxu1 %v2774_v14 }
 0x1cc   :  { %1344 = vmatmul.mubr.f32.gmra.mrb[22].mxu0 %v2759_v9  ;;  %1433 = vmatmul.mubr.f32.gmra.mrb[22].mxu1 %v2759_v9 }
 0x1cd   :  { %1349 = vmatprep.mubr.f32.mxu0 %v2785_v17  ;;  %1438 = vmatprep.mubr.f32.mxu1 %v2785_v17 }
 0x1d0   :  { %1350 = vmatmul.mubr.f32.gmra.mrb[24].mxu0 %v2782_v47  ;;  %1439 = vmatmul.mubr.f32.gmra.mrb[24].mxu1 %v2782_v47 }
 0x252   :  { %v1155_v5 = vpop.f32.mrb[10].mxu0  ;;  %v1244_v37 = vpop.f32.mrb[10].mxu1 }
 0x253   :  { %1445 = vst [vmem:[#allocation11] sm:$0xff] %v1155_v5  ;;  %1447 = vst [vmem:[#allocation11 + $0x10] sm:$0xff] %v1244_v37  ;;  %v1157_v29 = vpop.f32.mrb[11].mxu0  ;;  %v1246_v61 = vpop.f32.mrb[11].mxu1 }
 0x254   :  { %1446 = vst [vmem:[#allocation11 + $0x8] sm:$0xff] %v1157_v29  ;;  %1448 = vst [vmem:[#allocation11 + $0x18] sm:$0xff] %v1246_v61 }
 0x256   :  { %v1161_v14 = vpop.f32.mrb[12].mxu0 }
 0x257   :  { %v1250_v38 = vpop.f32.mrb[12].mxu1  ;;  %1462 = vst [vmem:[#allocation11 + $0x40] sm:$0xff] %v1161_v14  ;;  %v1163_v9 = vpop.f32.mrb[13].mxu0 }
 0x258   :  { %1464 = vst [vmem:[#allocation11 + $0x50] sm:$0xff] %v1250_v38  ;;  %v1252_v62 = vpop.f32.mrb[13].mxu1  ;;  %1463 = vst [vmem:[#allocation11 + $0x48] sm:$0xff] %v1163_v9 }
 0x259   :  { %1465 = vst [vmem:[#allocation11 + $0x58] sm:$0xff] %v1252_v62 }
 0x263   :  { %v1167_v17 = vpop.f32.mrb[14].mxu0  ;;  %v1256_v32 = vpop.f32.mrb[14].mxu1 }
 0x264   :  { %1453 = vst [vmem:[#allocation12] sm:$0xff] %v1167_v17  ;;  %1455 = vst [vmem:[#allocation12 + $0x10] sm:$0xff] %v1256_v32  ;;  %v1169_v47 = vpop.f32.mrb[15].mxu0  ;;  %v1258_v19 = vpop.f32.mrb[15].mxu1 }
 0x265   :  { %1454 = vst [vmem:[#allocation12 + $0x8] sm:$0xff] %v1169_v47  ;;  %1456 = vst [vmem:[#allocation12 + $0x18] sm:$0xff] %v1258_v19 }
 0x26b   :  { %v1173_v34 = vpop.f32.mrb[16].mxu0  ;;  %v1262_v2 = vpop.f32.mrb[16].mxu1 }
 0x26c   :  { %1471 = vst [vmem:[#allocation12 + $0x40] sm:$0xff] %v1173_v34  ;;  %1473 = vst [vmem:[#allocation12 + $0x50] sm:$0xff] %v1262_v2  ;;  %v1175_v3 = vpop.f32.mrb[17].mxu0  ;;  %v1264_v42 = vpop.f32.mrb[17].mxu1 }
 0x26d   :  { %1472 = vst [vmem:[#allocation12 + $0x48] sm:$0xff] %v1175_v3  ;;  %1474 = vst [vmem:[#allocation12 + $0x58] sm:$0xff] %v1264_v42 }
 0x297   :  { %v1333_v7 = vpop.f32.mrb[18].mxu0  ;;  %v1422_v45 = vpop.f32.mrb[18].mxu1 }
 0x298   :  { %1449 = vst [vmem:[#allocation11 + $0x20] sm:$0xff] %v1333_v7  ;;  %1451 = vst [vmem:[#allocation11 + $0x30] sm:$0xff] %v1422_v45  ;;  %v1335_v31 = vpop.f32.mrb[19].mxu0  ;;  %v1424_v46 = vpop.f32.mrb[19].mxu1 }
 0x299   :  { %1450 = vst [vmem:[#allocation11 + $0x28] sm:$0xff] %v1335_v31  ;;  %1452 = vst [vmem:[#allocation11 + $0x38] sm:$0xff] %v1424_v46 }
 0x29b   :  { %v1339_v12 = vpop.f32.mrb[20].mxu0  ;;  %v1428_v8 = vpop.f32.mrb[20].mxu1 }
 0x29c   :  { %1466 = vst [vmem:[#allocation11 + $0x60] sm:$0xff] %v1339_v12  ;;  %1468 = vst [vmem:[#allocation11 + $0x70] sm:$0xff] %v1428_v8  ;;  %v1341_v11 = vpop.f32.mrb[21].mxu0  ;;  %v1430_v25 = vpop.f32.mrb[21].mxu1 }
 0x29d   :  { %1467 = vst [vmem:[#allocation11 + $0x68] sm:$0xff] %v1341_v11  ;;  %1469 = vst [vmem:[#allocation11 + $0x78] sm:$0xff] %v1430_v25 }
 0x29e   :  { %1934 = shalt.err (!%p1931_p2)
}
 0x29f   :  { %s1935_s16 = scalar_lea.hbm %s2842_s5, 2048 }
 0x2a0   :  { %p1936_p3 = scmp.ne.s32.totalorder %s2842_s5, %s1935_s16  ;;  %p1939_p4 = scmp.lt.u32.totalorder %s1935_s16, %s2842_s5 }
 0x2a2   :  { %p1941_p5 = pnand %p1939_p4, %p1936_p3 }
 0x2a4   :  { %1944 = shalt.err (!%p1941_p5)
}
 0x2a5   :  { %1490 = dma.vmem_to_hbm [thread:$0]  %s1485_s11, 2048, %s2842_s5, [#allocation4], %s1986_s2, %s1986_s2, %s1987_s7   ;;  %v1345_v27 = vpop.f32.mrb[22].mxu0  ;;  %v1434_v23 = vpop.f32.mrb[22].mxu1 }
 0x2a6   :  { %1457 = vst [vmem:[#allocation12 + $0x20] sm:$0xff] %v1345_v27  ;;  %1459 = vst [vmem:[#allocation12 + $0x30] sm:$0xff] %v1434_v23  ;;  %v1347_v51 = vpop.f32.mrb[23].mxu0  ;;  %v1436_v22 = vpop.f32.mrb[23].mxu1  ;;  %s1991_s22 = smov [#allocation12]  }
 0x2a7   :  { %s1496_s23 = sshll.u32 %s1991_s22, 4  ;;  %1458 = vst [vmem:[#allocation12 + $0x28] sm:$0xff] %v1347_v51  ;;  %1460 = vst [vmem:[#allocation12 + $0x38] sm:$0xff] %v1436_v22  ;;  %v1351_v41 = vpop.f32.mrb[24].mxu0  ;;  %v1440_v15 = vpop.f32.mrb[24].mxu1  ;;  %s1497_s23 = int_to_ptr.vmem [resolvable:$true] %s1496_s23 }
 0x2a8   :  { %1475 = vst [vmem:[#allocation12 + $0x60] sm:$0xff] %v1351_v41  ;;  %1477 = vst [vmem:[#allocation12 + $0x70] sm:$0xff] %v1440_v15  ;;  %v1353_v1 = vpop.f32.mrb[25].mxu0  ;;  %v1442_v50 = vpop.f32.mrb[25].mxu1  ;;  %s1945_s5 = scalar_lea.vmem %s1497_s23, 2048  ;;  %p1950_p7 = scmp.lt.s32.totalorder %s1497_s23, %s1497_s23 }
 0x2a9   :  { %1476 = vst [vmem:[#allocation12 + $0x68] sm:$0xff] %v1353_v1  ;;  %1478 = vst [vmem:[#allocation12 + $0x78] sm:$0xff] %v1442_v50  ;;  %p1946_p6 = scmp.ne.s32.totalorder %s1497_s23, %s1945_s5  ;;  %p1951_p8 = scmp.lt.s32.totalorder %s1945_s5, %s1945_s5 }
 0x2ab   :  { %p1952_p9 = por %p1951_p8, %p1950_p7 }
 0x2ad   :  { %p1953_p10 = pnand %p1952_p9, %p1946_p6 }
 0x2af   :  { %1956 = shalt.err (!%p1953_p10)
}
 0x2b0   :  { %s1957_s24 = scalar_lea.hbm %s2843_s6, 2048 }
 0x2b1   :  { %p1958_p11 = scmp.ne.s32.totalorder %s2843_s6, %s1957_s24  ;;  %p1961_p12 = scmp.lt.u32.totalorder %s1957_s24, %s2843_s6 }
 0x2b3   :  { %p1963_p13 = pnand %p1961_p12, %p1958_p11 }
 0x2b5   :  { %1966 = shalt.err (!%p1963_p13)
}
 0x2b6   :  { %1502 = dma.vmem_to_hbm [thread:$0]  %s1497_s23, 2048, %s2843_s6, [#allocation13], %s1986_s2, %s1986_s2, %s1987_s7  }
 0x2b7   :  { %1973 = dma.done.wait [#allocation4], 2048  }
 0x2b8   :  { %1974 = vsyncadd [#allocation4], 4294965248 }
 0x2b9   :  { %1975 = dma.done.wait [#allocation13], 2048  }
 0x2ba   :  { %1976 = vsyncadd [#allocation13], 4294965248 }
 0x2bb   :  { %1509 = vsyncpa [#allocation3], 1 }
 0x2bc   :  { %1510 = vsyncpa [#allocation6], 1 }
 0x2bd   :  { %1511 = vsyncpa [#allocation9], 1 }
 0x2be   :  { %1512 = vsyncpa [#allocation4], 1 }
 0x2bf   :  { %1513 = vsyncpa [#allocation13], 1 }

</bundles_post_ra>
